<compile_context>
chip_gen: v6e
topology: v6e:2x2x1
jax: 0.10.0
libtpu: 0.0.40
codegen_flags: <defaults>
</compile_context>

<pallas_src>
import functools

import numpy as np
import jax
import jax.numpy as jnp
from jax.experimental import pallas as pl
from jax.experimental.pallas import tpu as pltpu


# -----------------------------------------------------------------------------
# Pallas kernel
# -----------------------------------------------------------------------------
def _relu_field_kernel(x_ref, grid_ref, nxy_ref, nz_ref, sel_ref, out_ref, *,
                       res, base_radius, volsdf):
    """One tile of points: factorized trilinear grid lookup + ReLUField head.

    x_ref:    (3, TN)       raw points (lane-dense rows x, y, z).
    grid_ref: (R*4, R^2)    transposed dense feature grid (resident).
    nxy_ref:  (R^2, 2)      f32 node coords: col 0 = ix of row, col 1 = iy.
    nz_ref:   (R*4, 1)      f32 z-node coord of each row (= row // 4).
    sel_ref:  (4, R*4)      constant channel selector, sel[c, iz*4+c] = 1.
    out_ref:  (4, TN)       [r, g, b, density] rows (lane-dense).
    """
    x = x_ref[...].astype(jnp.float32)                        # (3, TN)

    # Map [0, 1]^3 points onto the dense grid (continuous coordinate in
    # [0, R-1]); no floor / int path needed with hat-function weights.
    p = jnp.clip(x, 0.0, 1.0) * (res - 1.0)                   # (3, TN)
    px, py, pz = p[0:1, :], p[1:2, :], p[2:3, :]              # (1, TN) each

    # ---- Stage 1: bilinear-xy weights via hat functions, one MXU matmul ----
    # w[k] = max(0, 1 - |k - p|) reproduces (1 - f) / f at the two bracketing
    # nodes and 0 elsewhere, including the clamped boundary p = R-1.
    nx = nxy_ref[:, 0:1]                                       # (R^2, 1)
    ny = nxy_ref[:, 1:2]                                       # (R^2, 1)
    w_x = jnp.maximum(0.0, 1.0 - jnp.abs(nx - px))             # (R^2, TN)
    w_y = jnp.maximum(0.0, 1.0 - jnp.abs(ny - py))             # (R^2, TN)
    w_xy = (w_x * w_y).astype(grid_ref.dtype)                  # (R^2, TN)

    # (R*4, R^2) @ (R^2, TN) -> (R*4, TN); row index = iz*4 + c.
    h = jnp.dot(grid_ref[...], w_xy, preferred_element_type=jnp.float32)

    # ---- Stage 2: z hat weights as elementwise mask + tiny selector matmul --
    m = jnp.maximum(0.0, 1.0 - jnp.abs(nz_ref[...] - pz))      # (R*4, TN)
    hm = h * m                                                 # (R*4, TN)
    emb = jnp.dot(sel_ref[...], hm,
                  preferred_element_type=jnp.float32)          # (4, TN)

    # ---- Head: color = relu(emb[:3]); density = volsdf or relu branch. ------
    rgb = jnp.maximum(emb, 0.0)
    if volsdf:
        # norm of the RAW (unclipped) point, as in the torch module.
        norm = jnp.sqrt(jnp.sum(x * x, axis=0, keepdims=True))  # (1, TN)
        dens = emb + norm - base_radius
        srow = jax.lax.broadcasted_iota(jnp.int32, emb.shape, 0)
        out_ref[...] = jnp.where(srow < 3, rgb, dens)
    else:
        out_ref[...] = rgb


# -----------------------------------------------------------------------------
# Channel-major core (no transposes): points (3, N) -> features (4, N)
# -----------------------------------------------------------------------------
def relu_field_core(points_cm, grid_features, *, grid_res, base_radius=1.0,
                    parameterization='VolSDF', tile_n=4096,
                    use_bf16_weights=False):
    """Pallas ReLUField core on channel-major points.

    points_cm:     (3, N) f32 points in [0, 1]^3 (rows x, y, z).
    grid_features: (grid_res**3, 4) dense feature grid (x major, z fastest).
    Returns (4, N) f32 rows [r, g, b, density].

    use_bf16_weights: cast the grid + interpolation weights to bf16 before the
    MXU matmul (f32 accumulation preserved).  Only worthwhile on v6e/v7x and
    loosens precision to ~3 decimal digits; default off.
    """
    assert points_cm.shape[0] == 3
    assert grid_res >= 2
    n = points_cm.shape[1]
    r = grid_res

    # Effective tile: lane-dense multiple of 512, no larger than the data.
    tile = max(512, (int(tile_n) // 512) * 512)
    n_pad_min = ((n + 511) // 512) * 512
    tile = min(tile, n_pad_min)
    n_pad = ((n + tile - 1) // tile) * tile

    x_t = points_cm.astype(jnp.float32)
    if n_pad != n:
        x_t = jnp.pad(x_t, ((0, 0), (0, n_pad - n)))           # (3, n_pad)

    # grid_t[iz*4 + c, ix*R + iy] = grid[ix, iy, iz, c]
    grid_t = grid_features.astype(jnp.float32).reshape(r * r, r * 4).T
    if use_bf16_weights:
        grid_t = grid_t.astype(jnp.bfloat16)

    # Precomputed node-coordinate columns and channel selector (resident).
    idx = np.arange(r * r, dtype=np.float32)
    nodes_xy = jnp.asarray(np.stack([idx // r, idx % r], axis=1))   # (R^2, 2)
    nodes_z = jnp.asarray(
        (np.arange(4 * r, dtype=np.float32) // 4).reshape(4 * r, 1))  # (4R, 1)
    cols = np.arange(4 * r)
    sel_np = np.zeros((4, 4 * r), np.float32)
    sel_np[cols % 4, cols] = 1.0                                # sel[c, iz*4+c]=1
    sel = jnp.asarray(sel_np)

    # Exact torch gating (case-sensitive 'volsdf'); the module default
    # 'VolSDF' therefore takes the relu-density branch, as in PyTorch.
    volsdf = (parameterization == 'volsdf') and (base_radius is not None)
    kernel = functools.partial(
        _relu_field_kernel,
        res=r,
        base_radius=float(base_radius) if base_radius is not None else 0.0,
        volsdf=volsdf)

    flops = 2 * n_pad * (4 * r) * (r * r) + 2 * n_pad * 4 * (4 * r)
    bytes_accessed = (x_t.size * 4
                      + grid_t.size * grid_t.dtype.itemsize
                      + n_pad * 4 * 4)

    out_t = pl.pallas_call(
        kernel,
        out_shape=jax.ShapeDtypeStruct((4, n_pad), jnp.float32),
        grid=(n_pad // tile,),
        in_specs=[
            pl.BlockSpec((3, tile), lambda i: (0, i)),          # points tile
            pl.BlockSpec((4 * r, r * r), lambda i: (0, 0)),     # grid (resident)
            pl.BlockSpec((r * r, 2), lambda i: (0, 0)),         # xy node coords
            pl.BlockSpec((4 * r, 1), lambda i: (0, 0)),         # z node coords
            pl.BlockSpec((4, 4 * r), lambda i: (0, 0)),         # channel selector
        ],
        out_specs=pl.BlockSpec((4, tile), lambda i: (0, i)),
        compiler_params=pltpu.CompilerParams(
            dimension_semantics=("parallel",)),
        cost_estimate=pl.CostEstimate(
            flops=flops,
            transcendentals=n_pad if volsdf else 0,
            bytes_accessed=bytes_accessed),
    )(x_t, grid_t, nodes_xy, nodes_z, sel)

    return out_t[:, :n]                                         # (4, n)


# -----------------------------------------------------------------------------
# Spec-compatible wrapper (matches the PyTorch module's forward signature)
# -----------------------------------------------------------------------------
def relu_field_forward(mean, grid_features, *, grid_res, base_radius=1.0,
                       parameterization='VolSDF', render_color=True,
                       tile_n=4096, use_bf16_weights=False):
    """Pallas ReLUField forward.

    mean: [D, *batch, 3] points in [0, 1]^3.
    grid_features: (grid_res**3, 4) dense feature grid (the tcnn encoding,
        row-major with x major / z fastest, 4 features last).
    Returns [D, *batch, 4] if render_color else [D, *batch] (density only),
    matching the PyTorch module's semantics.

    NOTE: the two transposes below are pure layout plumbing to honor the
    module's point-major API; callers that can keep a channel-major (3, N) /
    (4, N) layout should call `relu_field_core` directly and skip them.
    """
    # NOTE: deformation_codes / cov / decayscales / render_deformation are
    # unused by the reference torch forward, so they are omitted here.
    batch_shape = mean.shape[:-1]
    assert mean.shape[-1] == 3
    n = int(np.prod(batch_shape))
    x_cm = mean.reshape(n, 3).astype(jnp.float32).T             # (3, n)

    out_cm = relu_field_core(
        x_cm, grid_features, grid_res=grid_res, base_radius=base_radius,
        parameterization=parameterization, tile_n=tile_n,
        use_bf16_weights=use_bf16_weights)                       # (4, n)

    out = out_cm.T                                               # (n, 4)
    if render_color:
        return out.reshape(*batch_shape, 4)
    return out[:, 3].reshape(*batch_shape)


# -----------------------------------------------------------------------------
# Pure-JAX reference (for correctness check)
# -----------------------------------------------------------------------------
def relu_field_reference(mean, grid_features, *, grid_res, base_radius=1.0,
                         parameterization='VolSDF', render_color=True):
    batch_shape = mean.shape[:-1]
    n = int(np.prod(batch_shape))
    x = mean.reshape(n, 3).astype(jnp.float32)

    p = jnp.clip(x, 0.0, 1.0) * (grid_res - 1)
    i0 = jnp.clip(jnp.floor(p).astype(jnp.int32), 0, grid_res - 2)
    f = p - i0.astype(jnp.float32)
    g = grid_features.reshape(grid_res, grid_res, grid_res, 4)

    emb = jnp.zeros((n, 4), jnp.float32)
    for dx in (0, 1):
        wx = f[:, 0] if dx else (1.0 - f[:, 0])
        for dy in (0, 1):
            wy = f[:, 1] if dy else (1.0 - f[:, 1])
            for dz in (0, 1):
                wz = f[:, 2] if dz else (1.0 - f[:, 2])
                w = (wx * wy * wz)[:, None]
                emb = emb + w * g[i0[:, 0] + dx, i0[:, 1] + dy, i0[:, 2] + dz]

    emb_density, emb_color = emb[:, 3:], emb[:, :3]
    if parameterization == 'volsdf' and base_radius is not None:
        d = emb_density + jnp.linalg.norm(x, axis=-1, keepdims=True) - base_radius
    else:
        d = jnp.maximum(emb_density, 0.0)
    if render_color:
        raw = jnp.concatenate([jnp.maximum(emb_color, 0.0), d], axis=-1)
        return raw.reshape(*batch_shape, 4)
    return d.reshape(*batch_shape)


# -----------------------------------------------------------------------------
# Demo
# -----------------------------------------------------------------------------
if __name__ == "__main__":
    key = jax.random.PRNGKey(0)
    k_pts, k_grid = jax.random.split(key)

    GRID_RES = 8                       # dense grid resolution per axis
    D, B = 2, 512                      # mean is [D, *batch, 3] -> 1024 points
    mean = jax.random.uniform(k_pts, (D, B, 3), dtype=jnp.float32)   # in [0,1]^3
    # Deterministic "reset_parameters": small random dense-grid features.
    grid_features = 0.1 * jax.random.normal(
        k_grid, (GRID_RES ** 3, 4), dtype=jnp.float32)

    ok = True
    for param in ('volsdf', 'VolSDF'):   # volsdf branch and default relu branch
        out = relu_field_forward(
            mean, grid_features, grid_res=GRID_RES, base_radius=1.0,
            parameterization=param, render_color=True)
        out = jax.block_until_ready(out)
        ref = relu_field_reference(
            mean, grid_features, grid_res=GRID_RES, base_radius=1.0,
            parameterization=param, render_color=True)
        np.testing.assert_allclose(np.asarray(out), np.asarray(ref),
                                   rtol=1e-4, atol=1e-5)
        ok = ok and out.shape == (D, B, 4) and out.dtype == jnp.float32

    # density-only path
    dens = relu_field_forward(
        mean, grid_features, grid_res=GRID_RES, base_radius=1.0,
        parameterization='volsdf', render_color=False)
    dens = jax.block_until_ready(dens)
    dens_ref = relu_field_reference(
        mean, grid_features, grid_res=GRID_RES, base_radius=1.0,
        parameterization='volsdf', render_color=False)
    np.testing.assert_allclose(np.asarray(dens), np.asarray(dens_ref),
                               rtol=1e-4, atol=1e-5)
    ok = ok and dens.shape == (D, B)

    # Channel-major core path (transpose-free layout) also checked once.
    out_cm = relu_field_core(
        mean.reshape(-1, 3).T, grid_features, grid_res=GRID_RES,
        base_radius=1.0, parameterization='volsdf')
    out_cm = jax.block_until_ready(out_cm)
    np.testing.assert_allclose(
        np.asarray(out_cm.T.reshape(D, B, 4)),
        np.asarray(relu_field_reference(
            mean, grid_features, grid_res=GRID_RES, base_radius=1.0,
            parameterization='volsdf', render_color=True)),
        rtol=1e-4, atol=1e-5)

    # TODO(synk): for grid_res >~ 16, switch stage 1 to a gather design
    # (grid in pl.ANY + DMA/jnp.take of the 4 xy-corner columns) instead of the
    # dense (R^2, TN) hat-weight matrix, which scales O(R^2) per point.

    if ok:
        print("KERNEL_OK")
</pallas_src>

<mosaic_0001>
module attributes {stable_mosaic.version = 11 : i64} {
  func.func @_relu_field_kernel(%arg0: i32, %arg1: memref<3x1024xf32, #tpu.memory_space<vmem>>, %arg2: memref<32x64xf32, #tpu.memory_space<vmem>>, %arg3: memref<64x2xf32, #tpu.memory_space<vmem>>, %arg4: memref<32x1xf32, #tpu.memory_space<vmem>>, %arg5: memref<4x32xf32, #tpu.memory_space<vmem>>, %arg6: memref<4x1024xf32, #tpu.memory_space<vmem>>) attributes {dimension_semantics = [#tpu.dimension_semantics<parallel>], iteration_bounds = array<i64: 1>, scalar_prefetch = 0 : i64, scratch_operands = 0 : i64, tpu.core_type = #tpu.core_type<tc>, window_params = [{transform_indices = @transform_0, window_bounds = array<i64: 3, 1024>}, {pipeline_mode = #tpu.pipeline_mode<synchronous>, transform_indices = @transform_1, window_bounds = array<i64: 32, 64>}, {pipeline_mode = #tpu.pipeline_mode<synchronous>, transform_indices = @transform_2, window_bounds = array<i64: 64, 2>}, {pipeline_mode = #tpu.pipeline_mode<synchronous>, transform_indices = @transform_3, window_bounds = array<i64: 32, 1>}, {pipeline_mode = #tpu.pipeline_mode<synchronous>, transform_indices = @transform_4, window_bounds = array<i64: 4, 32>}, {transform_indices = @transform_5, window_bounds = array<i64: 4, 1024>}]} {
    %c0 = arith.constant 0 : index
    %c0_0 = arith.constant 0 : index
    %0 = vector.load %arg1[%c0, %c0_0] : memref<3x1024xf32, #tpu.memory_space<vmem>>, vector<3x1024xf32>
    %cst = arith.constant 0.000000e+00 : f32
    %cst_1 = arith.constant 1.000000e+00 : f32
    %1 = vector.broadcast %cst : f32 to vector<3x1024xf32>
    %2 = arith.maximumf %1, %0 : vector<3x1024xf32>
    %3 = vector.broadcast %cst_1 : f32 to vector<3x1024xf32>
    %4 = arith.minimumf %3, %2 : vector<3x1024xf32>
    %cst_2 = arith.constant 7.000000e+00 : f32
    %5 = vector.broadcast %cst_2 : f32 to vector<3x1024xf32>
    %6 = arith.mulf %4, %5 : vector<3x1024xf32>
    %7 = vector.extract_strided_slice %6 {offsets = [0, 0], sizes = [1, 1024], strides = [1, 1]} : vector<3x1024xf32> to vector<1x1024xf32>
    %8 = vector.extract_strided_slice %6 {offsets = [1, 0], sizes = [1, 1024], strides = [1, 1]} : vector<3x1024xf32> to vector<1x1024xf32>
    %9 = vector.extract_strided_slice %6 {offsets = [2, 0], sizes = [1, 1024], strides = [1, 1]} : vector<3x1024xf32> to vector<1x1024xf32>
    %c0_3 = arith.constant 0 : index
    %c0_4 = arith.constant 0 : index
    %10 = vector.load %arg3[%c0_3, %c0_4] : memref<64x2xf32, #tpu.memory_space<vmem>>, vector<64x1xf32>
    %c0_5 = arith.constant 0 : index
    %c1 = arith.constant 1 : index
    %11 = vector.load %arg3[%c0_5, %c1] : memref<64x2xf32, #tpu.memory_space<vmem>>, vector<64x1xf32>
    %12 = vector.broadcast %10 : vector<64x1xf32> to vector<64x1024xf32>
    %13 = vector.broadcast %7 : vector<1x1024xf32> to vector<64x1024xf32>
    %14 = arith.subf %12, %13 : vector<64x1024xf32>
    %15 = math.absf %14 : vector<64x1024xf32>
    %cst_6 = arith.constant 1.000000e+00 : f32
    %16 = vector.broadcast %cst_6 : f32 to vector<64x1024xf32>
    %17 = arith.subf %16, %15 : vector<64x1024xf32>
    %cst_7 = arith.constant 0.000000e+00 : f32
    %18 = vector.broadcast %cst_7 : f32 to vector<64x1024xf32>
    %19 = arith.maximumf %18, %17 : vector<64x1024xf32>
    %20 = vector.broadcast %11 : vector<64x1xf32> to vector<64x1024xf32>
    %21 = vector.broadcast %8 : vector<1x1024xf32> to vector<64x1024xf32>
    %22 = arith.subf %20, %21 : vector<64x1024xf32>
    %23 = math.absf %22 : vector<64x1024xf32>
    %cst_8 = arith.constant 1.000000e+00 : f32
    %24 = vector.broadcast %cst_8 : f32 to vector<64x1024xf32>
    %25 = arith.subf %24, %23 : vector<64x1024xf32>
    %cst_9 = arith.constant 0.000000e+00 : f32
    %26 = vector.broadcast %cst_9 : f32 to vector<64x1024xf32>
    %27 = arith.maximumf %26, %25 : vector<64x1024xf32>
    %28 = arith.mulf %19, %27 : vector<64x1024xf32>
    %c0_10 = arith.constant 0 : index
    %c0_11 = arith.constant 0 : index
    %29 = vector.load %arg2[%c0_10, %c0_11] : memref<32x64xf32, #tpu.memory_space<vmem>>, vector<32x64xf32>
    %cst_12 = arith.constant dense<0.000000e+00> : vector<32x1024xf32>
    %30 = tpu.matmul %29, %28, %cst_12 {dimension_numbers = #tpu.dot_dimension_numbers<[1], [0], [0], [1], [0, 0, 1, 1], [], []>} : vector<32x64xf32>, vector<64x1024xf32>, vector<32x1024xf32> -> vector<32x1024xf32>
    %c0_13 = arith.constant 0 : index
    %c0_14 = arith.constant 0 : index
    %31 = vector.load %arg4[%c0_13, %c0_14] : memref<32x1xf32, #tpu.memory_space<vmem>>, vector<32x1xf32>
    %32 = vector.broadcast %31 : vector<32x1xf32> to vector<32x1024xf32>
    %33 = vector.broadcast %9 : vector<1x1024xf32> to vector<32x1024xf32>
    %34 = arith.subf %32, %33 : vector<32x1024xf32>
    %35 = math.absf %34 : vector<32x1024xf32>
    %cst_15 = arith.constant 1.000000e+00 : f32
    %36 = vector.broadcast %cst_15 : f32 to vector<32x1024xf32>
    %37 = arith.subf %36, %35 : vector<32x1024xf32>
    %cst_16 = arith.constant 0.000000e+00 : f32
    %38 = vector.broadcast %cst_16 : f32 to vector<32x1024xf32>
    %39 = arith.maximumf %38, %37 : vector<32x1024xf32>
    %40 = arith.mulf %30, %39 : vector<32x1024xf32>
    %c0_17 = arith.constant 0 : index
    %c0_18 = arith.constant 0 : index
    %41 = vector.load %arg5[%c0_17, %c0_18] : memref<4x32xf32, #tpu.memory_space<vmem>>, vector<4x32xf32>
    %cst_19 = arith.constant dense<0.000000e+00> : vector<4x1024xf32>
    %42 = tpu.matmul %41, %40, %cst_19 {dimension_numbers = #tpu.dot_dimension_numbers<[1], [0], [0], [1], [0, 0, 1, 1], [], []>} : vector<4x32xf32>, vector<32x1024xf32>, vector<4x1024xf32> -> vector<4x1024xf32>
    %cst_20 = arith.constant 0.000000e+00 : f32
    %43 = vector.broadcast %cst_20 : f32 to vector<4x1024xf32>
    %44 = arith.maximumf %42, %43 : vector<4x1024xf32>
    %45 = arith.mulf %0, %0 : vector<3x1024xf32>
    %cst_21 = arith.constant dense<0.000000e+00> : vector<1024xf32>
    %46 = vector.multi_reduction <add>, %45, %cst_21 [0] : vector<3x1024xf32> to vector<1024xf32>
    %47 = vector.shape_cast %46 : vector<1024xf32> to vector<1x1024xf32>
    %48 = math.sqrt %47 : vector<1x1024xf32>
    %49 = vector.broadcast %48 : vector<1x1024xf32> to vector<4x1024xf32>
    %50 = arith.addf %42, %49 : vector<4x1024xf32>
    %cst_22 = arith.constant 1.000000e+00 : f32
    %51 = vector.broadcast %cst_22 : f32 to vector<4x1024xf32>
    %52 = arith.subf %50, %51 : vector<4x1024xf32>
    %53 = tpu.iota {dimensions = array<i32: 0>} : vector<4x1024xi32>
    %c3_i32 = arith.constant 3 : i32
    %54 = vector.broadcast %c3_i32 : i32 to vector<4x1024xi32>
    %55 = arith.cmpi slt, %53, %54 : vector<4x1024xi32>
    %56 = arith.select %55, %44, %52 : vector<4x1024xi1>, vector<4x1024xf32>
    %c0_23 = arith.constant 0 : index
    %c0_24 = arith.constant 0 : index
    %57 = vector.load %arg6[%c0_23, %c0_24] : memref<4x1024xf32, #tpu.memory_space<vmem>>, vector<4x1024xf32>
    tpu.vector_store %arg6[%c0_23, %c0_24], %56 {strides = array<i32>} : memref<4x1024xf32, #tpu.memory_space<vmem>>, vector<4x1024xf32>,
    return
  }
  func.func @transform_0(%arg0: i32) -> (i32, i32) {
    %c0_i32 = arith.constant 0 : i32
    %c0_i32_0 = arith.constant 0 : i32
    return %c0_i32, %arg0 : i32, i32
  }
  func.func @transform_1(%arg0: i32) -> (i32, i32) {
    %c0_i32 = arith.constant 0 : i32
    %c0_i32_0 = arith.constant 0 : i32
    %c0_i32_1 = arith.constant 0 : i32
    return %c0_i32, %c0_i32_0 : i32, i32
  }
  func.func @transform_2(%arg0: i32) -> (i32, i32) {
    %c0_i32 = arith.constant 0 : i32
    %c0_i32_0 = arith.constant 0 : i32
    %c0_i32_1 = arith.constant 0 : i32
    return %c0_i32, %c0_i32_0 : i32, i32
  }
  func.func @transform_3(%arg0: i32) -> (i32, i32) {
    %c0_i32 = arith.constant 0 : i32
    %c0_i32_0 = arith.constant 0 : i32
    %c0_i32_1 = arith.constant 0 : i32
    return %c0_i32, %c0_i32_0 : i32, i32
  }
  func.func @transform_4(%arg0: i32) -> (i32, i32) {
    %c0_i32 = arith.constant 0 : i32
    %c0_i32_0 = arith.constant 0 : i32
    %c0_i32_1 = arith.constant 0 : i32
    return %c0_i32, %c0_i32_0 : i32, i32
  }
  func.func @transform_5(%arg0: i32) -> (i32, i32) {
    %c0_i32 = arith.constant 0 : i32
    %c0_i32_0 = arith.constant 0 : i32
    return %c0_i32, %arg0 : i32, i32
  }
}

</mosaic_0001>

<bundles_post_ra>
// kernel: tpu_custom_call.1
= control target key start
LH: loop header
LB: loop body
LE: loop exit
PB: predicated region body
PF: predicated region fallthrough
CT: control target
= control target key end

     0   :  { %v2037_v2 = vmov 0   ;;  %s2734_s0 = inlined_call_operand.vmem [shape: f32[3,1024], index: 0, kind: input, shape index: {}]   ;;  %s2735_s1 = inlined_call_operand.vmem [shape: f32[32,64], index: 1, kind: input, shape index: {}]   ;;  %s2736_s2 = inlined_call_operand.vmem [shape: f32[64,2], index: 2, kind: input, shape index: {}]   ;;  %s2737_s3 = inlined_call_operand.vmem [shape: f32[32,1], index: 3, kind: input, shape index: {}]   ;;  %s2738_s4 = inlined_call_operand.vmem [shape: f32[4,32], index: 4, kind: input, shape index: {}]   ;;  %s2739_s5 = inlined_call_operand.hbm [shape: f32[4,1024], index: 5, kind: output, shape index: {}]  }
   0x1   :  { %v44_v0 = vld [vmem:[%s2736_s2 + $0x38] sm:$0xff]  ;;  %v43_v1 = vld [vmem:[%s2736_s2 + $0x30] sm:$0xff]  ;;  %1991 = vset.pattern.permute.xlu1 %v2037_v2  ;;  %1989 = vset.pattern.permute.xlu0 %v2037_v2 }
   0x2   :  { %82 = vperm.xlu0 %1989, %v44_v0   ;;  %77 = vperm.xlu1 %1991, %v43_v1  }
   0x3   :  { %10 = vsyncpa [#allocation3], 0  ;;  %v2038_v3 = vmov 1   ;;  %v42_v4 = vld [vmem:[%s2736_s2 + $0x28] sm:$0xff]  ;;  %v41_v5 = vld [vmem:[%s2736_s2 + $0x20] sm:$0xff]  ;;  %v89_v8 = vlaneseq  ;;  %v2039_v29 = vmov 0.0  }
   0x4   :  { %v40_v6 = vld [vmem:[%s2736_s2 + $0x18] sm:$0xff]  ;;  %v39_v7 = vld [vmem:[%s2736_s2 + $0x10] sm:$0xff]  ;;  %v38_v9 = vld [vmem:[%s2736_s2 + $0x8] sm:$0xff]  ;;  %922 = vmatprep.mubr.f32.mxu0 %v2039_v29  ;;  %1011 = vmatprep.mubr.f32.mxu1 %v2039_v29  ;;  %vm845_vm0 = vcmask 523264   ;;  %vm1471_vm1 = vcmask 261120   ;;  %vm1783_vm2 = vcmask 1042432  }
   0x5   :  { %v2092_v10 = vshrl.u32 %v89_v8, 7  ;;  %v23_v11 = vld [vmem:[%s2734_s0 + $0x10] sm:$0x77]  ;;  %v37_v13 = vld [vmem:[%s2736_s2] sm:$0xff]  ;;  %v1217_v17 = vld [vmem:[%s2737_s3 + $0x18] sm:$0xff] }
   0x6   :  { %1990 = vset.pattern.permute.xlu0 %v2038_v3  ;;  %1992 = vset.pattern.permute.xlu1 %v2038_v3  ;;  %v27_v12 = vmax.f32 %v23_v11, 0.0  ;;  %v1215_v21 = vld [vmem:[%s2737_s3 + $0x8] sm:$0xff]  ;;  %v1214_v22 = vld [vmem:[%s2737_s3] sm:$0xff]  ;;  %v24_v23 = vld [vmem:[%s2734_s0 + $0x18] sm:$0x77] }
   0x7   :  { %446 = vperm.xlu0 %1990, %v44_v0   ;;  %442 = vperm.xlu1 %1992, %v43_v1   ;;  %v95_v14 = vsub.s32 4, %v2092_v10  ;;  %v91_v18 = vsub.s32 0, %v2092_v10  ;;  %v28_v24 = vmax.f32 %v24_v23, 0.0  ;;  %v21_v30 = vld [vmem:[%s2734_s0] sm:$0x77]  ;;  %v451_v38 = vsub.s32 1, %v2092_v10 }
   0x8   :  { %v31_v15 = vmin.f32 %v27_v12, 1.0  ;;  %v22_v31 = vld [vmem:[%s2734_s0 + $0x8] sm:$0x77]  ;;  %v25_v32 = vmax.f32 %v21_v30, 0.0  ;;  %v455_v39 = vsub.s32 5, %v2092_v10  ;;  %vm1914_vm11 = vcmp.lt.s32.totalorder %v2092_v10, 3 }
   0x9   :  { %v32_v25 = vmin.f32 %v28_v24, 1.0  ;;  %v26_v33 = vmax.f32 %v22_v31, 0.0 }
   0xa   :  { %v2101_v16 = vmul.f32 7.0, %v31_v15  ;;  %v29_v34 = vmin.f32 %v25_v32, 1.0 }
   0xb   :  { %1993 = vset.pattern.permute.xlu1 %v2037_v2  ;;  %438 = vperm.xlu0 %1990, %v42_v4   ;;  %v2119_v26 = vmul.f32 7.0, %v32_v25  ;;  %v30_v35 = vmin.f32 %v26_v33, 1.0 }
   0xc   :  { %72 = vperm.xlu1 %1993, %v42_v4   ;;  %v112_v19 = vrot.slane %v2101_v16, %v95_v14  ;;  %v2132_v36 = vmul.f32 7.0, %v29_v34  ;;  %v472_v48 = vrot.slane %v2101_v16, %v455_v39  ;;  %v108_v49 = vrot.slane %v2101_v16, %v91_v18 }
   0xd   :  { %v120_v27 = vrot.slane %v2119_v26, %v95_v14  ;;  %v2134_v37 = vmul.f32 7.0, %v30_v35  ;;  %v480_v50 = vrot.slane %v2119_v26, %v455_v39  ;;  %v468_v51 = vrot.slane %v2101_v16, %v451_v38 }
   0xe   :  { %v2108_v20 = vrot.slane %v112_v19, %v91_v18  ;;  %v96_v40 = vrot.slane %v2132_v36, %v95_v14  ;;  %v92_v42 = vrot.slane %v2132_v36, %v91_v18  ;;  %v456_v44 = vrot.slane %v2132_v36, %v455_v39 }
   0xf   :  { %434 = vperm.xlu0 %1990, %v41_v5   ;;  %v2122_v28 = vrot.slane %v120_v27, %v91_v18  ;;  %v104_v41 = vrot.slane %v2134_v37, %v95_v14  ;;  %v100_v43 = vrot.slane %v2134_v37, %v91_v18  ;;  %v452_v45 = vrot.slane %v2132_v36, %v451_v38 }
  0x10   :  { %67 = vperm.xlu1 %1993, %v41_v5   ;;  %v464_v46 = vrot.slane %v2134_v37, %v455_v39  ;;  %v460_v47 = vrot.slane %v2134_v37, %v451_v38  ;;  %v116_v52 = vrot.slane %v2119_v26, %v91_v18  ;;  %v476_v53 = vrot.slane %v2119_v26, %v451_v38 }
  0x11   :  { %v2152_v54 = vrot.slane %v96_v40, %v91_v18  ;;  %v2154_v55 = vrot.slane %v104_v41, %v91_v18  ;;  %v2156_v56 = vrot.slane %v92_v42, %v91_v18  ;;  %v2158_v57 = vrot.slane %v100_v43, %v91_v18 }
  0x12   :  { %v2160_v58 = vrot.slane %v456_v44, %v451_v38  ;;  %v2162_v59 = vrot.slane %v452_v45, %v451_v38  ;;  %v2164_v60 = vrot.slane %v464_v46, %v451_v38  ;;  %v2166_v61 = vrot.slane %v460_v47, %v451_v38 }
  0x13   :  { %430 = vperm.xlu0 %1990, %v40_v6   ;;  %v2168_v62 = vrot.slane %v472_v48, %v451_v38  ;;  %v2170_v63 = vrot.slane %v108_v49, %v91_v18  ;;  %v2178_v3 = vrot.slane %v468_v51, %v451_v38  ;;  %v2180_v4 = vrot.slane %v116_v52, %v91_v18 }
  0x14   :  { %62 = vperm.xlu1 %1993, %v40_v6   ;;  %v2182_v5 = vrot.slane %v476_v53, %v451_v38 }
  0x17   :  { %426 = vperm.xlu0 %1990, %v39_v7  }
  0x18   :  { %57 = vperm.xlu1 %1993, %v39_v7  }
  0x1b   :  { %422 = vperm.xlu0 %1990, %v38_v9  }
  0x1c   :  { %52 = vperm.xlu1 %1993, %v38_v9  }
  0x1f   :  { %418 = vperm.xlu0 %1990, %v37_v13  }
  0x20   :  { %47 = vperm.xlu1 %1993, %v37_v13  }
  0x23   :  { %1994 = vset.pattern.permute.xlu0 %v2037_v2  ;;  %v2176_v2 = vrot.slane %v480_v50, %v451_v38 }
  0x24   :  { %1235 = vperm.xlu1 %1993, %v1217_v17  }
  0x28   :  { %1225 = vperm.xlu1 %1993, %v1215_v21  }
  0x2c   :  { %1220 = vperm.xlu1 %1993, %v1214_v22  }
  0x7d   :  { %v2172_v0 = vpop.permute.xlu1 %77  ;;  %v2174_v1 = vpop.permute.xlu0 %82 }
  0x7e   :  { %v218_v6 = vsub.f32 %v2174_v1, %v2152_v54  ;;  %v220_v7 = vsub.f32 %v2174_v1, %v2154_v55  ;;  %v217_v8 = vsub.f32 %v2174_v1, %v2156_v56  ;;  %v219_v9 = vsub.f32 %v2174_v1, %v2158_v57 }
  0x7f   :  { %v210_v11 = vsub.f32 %v2172_v0, %v2152_v54  ;;  %v212_v12 = vsub.f32 %v2172_v0, %v2154_v55  ;;  %v209_v13 = vsub.f32 %v2172_v0, %v2156_v56  ;;  %v211_v14 = vsub.f32 %v2172_v0, %v2158_v57 }
  0x80   :  { %v282_v15 = vand.u32 2147483647, %v218_v6  ;;  %v284_v17 = vand.u32 2147483647, %v220_v7  ;;  %v281_v18 = vand.u32 2147483647, %v217_v8  ;;  %v222_v19 = vsub.f32 %v2174_v1, %v2108_v20 }
  0x81   :  { %v283_v21 = vand.u32 2147483647, %v219_v9  ;;  %v274_v22 = vand.u32 2147483647, %v210_v11  ;;  %v276_v23 = vand.u32 2147483647, %v212_v12  ;;  %v224_v24 = vsub.f32 %v2174_v1, %v2122_v28 }
  0x82   :  { %v2204_v25 = vpop.permute.xlu0 %446  ;;  %v2206_v27 = vpop.permute.xlu1 %442  ;;  %v346_v30 = vsub.f32 1.0, %v282_v15  ;;  %v348_v31 = vsub.f32 1.0, %v284_v17  ;;  %v345_v32 = vsub.f32 1.0, %v281_v18  ;;  %v273_v33 = vand.u32 2147483647, %v209_v13 }
  0x83   :  { %v578_v34 = vsub.f32 %v2204_v25, %v2160_v58  ;;  %v580_v35 = vsub.f32 %v2204_v25, %v2164_v60  ;;  %v577_v38 = vsub.f32 %v2204_v25, %v2162_v59  ;;  %v347_v39 = vsub.f32 1.0, %v283_v21 }
  0x84   :  { %v410_v40 = vmax.f32 %v346_v30, 0.0  ;;  %v412_v41 = vmax.f32 %v348_v31, 0.0  ;;  %v409_v42 = vmax.f32 %v345_v32, 0.0  ;;  %v579_v43 = vsub.f32 %v2204_v25, %v2166_v61 }
  0x85   :  { %v642_v44 = vand.u32 2147483647, %v578_v34  ;;  %v644_v45 = vand.u32 2147483647, %v580_v35  ;;  %v641_v46 = vand.u32 2147483647, %v577_v38  ;;  %v570_v47 = vsub.f32 %v2206_v27, %v2160_v58 }
  0x86   :  { %v411_v48 = vmax.f32 %v347_v39, 0.0  ;;  %v643_v49 = vand.u32 2147483647, %v579_v43  ;;  %v338_v50 = vsub.f32 1.0, %v274_v22  ;;  %v340_v51 = vsub.f32 1.0, %v276_v23  ;;  %v2224_v32 = vpop.permute.xlu0 %438 }
  0x87   :  { %v706_v52 = vsub.f32 1.0, %v642_v44  ;;  %v708_v53 = vsub.f32 1.0, %v644_v45  ;;  %v705_v6 = vsub.f32 1.0, %v641_v46  ;;  %v634_v7 = vand.u32 2147483647, %v570_v47  ;;  %v2220_v21 = vpop.permute.xlu1 %72 }
  0x88   :  { %v707_v8 = vsub.f32 1.0, %v643_v49  ;;  %v402_v9 = vmax.f32 %v338_v50, 0.0  ;;  %v404_v11 = vmax.f32 %v340_v51, 0.0  ;;  %v572_v12 = vsub.f32 %v2206_v27, %v2164_v60 }
  0x89   :  { %v770_v13 = vmax.f32 %v706_v52, 0.0  ;;  %v772_v15 = vmax.f32 %v708_v53, 0.0  ;;  %v769_v17 = vmax.f32 %v705_v6, 0.0  ;;  %v698_v18 = vsub.f32 1.0, %v634_v7 }
  0x8a   :  { %v771_v30 = vmax.f32 %v707_v8, 0.0  ;;  %v636_v31 = vand.u32 2147483647, %v572_v12  ;;  %v337_v22 = vsub.f32 1.0, %v273_v33  ;;  %v569_v23 = vsub.f32 %v2206_v27, %v2162_v59 }
  0x8b   :  { %v834_v34 = vmul.f32 %v770_v13, %v410_v40  ;;  %v836_v35 = vmul.f32 %v772_v15, %v412_v41  ;;  %v833_v38 = vmul.f32 %v769_v17, %v409_v42  ;;  %v762_v39 = vmax.f32 %v698_v18, 0.0 }
  0x8c   :  { %v835_v43 = vmul.f32 %v771_v30, %v411_v48  ;;  %v700_v44 = vsub.f32 1.0, %v636_v31  ;;  %v401_v45 = vmax.f32 %v337_v22, 0.0  ;;  %v633_v46 = vand.u32 2147483647, %v569_v23  ;;  %v2238_v23 = vpop.permute.xlu1 %67 }
  0x8d   :  { %874 = vmatprep.subr.mxu0 %v834_v34  ;;  %963 = vmatprep.subr.mxu1 %v836_v35  ;;  %v826_v47 = vmul.f32 %v762_v39, %v402_v9  ;;  %v275_v49 = vand.u32 2147483647, %v211_v14  ;;  %v571_v33 = vsub.f32 %v2206_v27, %v2166_v61  ;;  %v202_v50 = vsub.f32 %v2220_v21, %v2152_v54  ;;  %v2242_v39 = vpop.permute.xlu0 %434 }
  0x8e   :  { %875 = vmatpush1.msra.mxu0 %v833_v38  ;;  %964 = vmatpush1.msra.mxu1 %v835_v43  ;;  %v764_v40 = vmax.f32 %v700_v44, 0.0  ;;  %v697_v41 = vsub.f32 1.0, %v633_v46  ;;  %v562_v42 = vsub.f32 %v2224_v32, %v2160_v58  ;;  %v204_v48 = vsub.f32 %v2220_v21, %v2154_v55 }
  0x8f   :  { %876 = vmatprep.subr.mxu0 %v826_v47  ;;  %v339_v51 = vsub.f32 1.0, %v275_v49  ;;  %v635_v52 = vand.u32 2147483647, %v571_v33  ;;  %v266_v14 = vand.u32 2147483647, %v202_v50  ;;  %v564_v53 = vsub.f32 %v2224_v32, %v2164_v60 }
  0x90   :  { %v828_v6 = vmul.f32 %v764_v40, %v404_v11  ;;  %v761_v7 = vmax.f32 %v697_v41, 0.0  ;;  %v626_v8 = vand.u32 2147483647, %v562_v42  ;;  %v268_v9 = vand.u32 2147483647, %v204_v48 }
  0x91   :  { %v403_v12 = vmax.f32 %v339_v51, 0.0  ;;  %v699_v13 = vsub.f32 1.0, %v635_v52  ;;  %v330_v15 = vsub.f32 1.0, %v266_v14  ;;  %v628_v17 = vand.u32 2147483647, %v564_v53 }
  0x92   :  { %965 = vmatprep.subr.mxu1 %v828_v6  ;;  %v825_v18 = vmul.f32 %v761_v7, %v401_v45  ;;  %v690_v30 = vsub.f32 1.0, %v626_v8  ;;  %v332_v31 = vsub.f32 1.0, %v268_v9  ;;  %v201_v22 = vsub.f32 %v2220_v21, %v2156_v56 }
  0x93   :  { %v763_v34 = vmax.f32 %v699_v13, 0.0  ;;  %v394_v35 = vmax.f32 %v330_v15, 0.0  ;;  %v692_v38 = vsub.f32 1.0, %v628_v17  ;;  %v561_v11 = vsub.f32 %v2224_v32, %v2162_v59 }
  0x94   :  { %877 = vmatpush1.msra.mxu0 %v825_v18  ;;  %v754_v43 = vmax.f32 %v690_v30, 0.0  ;;  %v396_v44 = vmax.f32 %v332_v31, 0.0  ;;  %v265_v46 = vand.u32 2147483647, %v201_v22  ;;  %v203_v45 = vsub.f32 %v2220_v21, %v2158_v57 }
  0x95   :  { %v827_v47 = vmul.f32 %v763_v34, %v403_v12  ;;  %v756_v49 = vmax.f32 %v692_v38, 0.0  ;;  %v625_v33 = vand.u32 2147483647, %v561_v11  ;;  %v563_v50 = vsub.f32 %v2224_v32, %v2166_v61 }
  0x96   :  { %v818_v40 = vmul.f32 %v754_v43, %v394_v35  ;;  %v329_v41 = vsub.f32 1.0, %v265_v46  ;;  %v267_v42 = vand.u32 2147483647, %v203_v45  ;;  %v194_v48 = vsub.f32 %v2238_v23, %v2152_v54  ;;  %v2258_v43 = vpop.permute.xlu1 %62 }
  0x97   :  { %966 = vmatpush1.msra.mxu1 %v827_v47  ;;  %v820_v51 = vmul.f32 %v756_v49, %v396_v44  ;;  %v689_v52 = vsub.f32 1.0, %v625_v33  ;;  %v627_v14 = vand.u32 2147483647, %v563_v50  ;;  %v554_v53 = vsub.f32 %v2242_v39, %v2160_v58  ;;  %v2262_v49 = vpop.permute.xlu0 %430 }
  0x98   :  { %878 = vmatprep.subr.mxu0 %v818_v40  ;;  %v393_v6 = vmax.f32 %v329_v41, 0.0  ;;  %v331_v7 = vsub.f32 1.0, %v267_v42  ;;  %v258_v8 = vand.u32 2147483647, %v194_v48  ;;  %v196_v9 = vsub.f32 %v2238_v23, %v2154_v55 }
  0x99   :  { %967 = vmatprep.subr.mxu1 %v820_v51  ;;  %v753_v12 = vmax.f32 %v689_v52, 0.0  ;;  %v691_v13 = vsub.f32 1.0, %v627_v14  ;;  %v618_v15 = vand.u32 2147483647, %v554_v53  ;;  %v556_v17 = vsub.f32 %v2242_v39, %v2164_v60 }
  0x9a   :  { %v395_v18 = vmax.f32 %v331_v7, 0.0  ;;  %v322_v30 = vsub.f32 1.0, %v258_v8  ;;  %v260_v31 = vand.u32 2147483647, %v196_v9  ;;  %v193_v22 = vsub.f32 %v2238_v23, %v2156_v56 }
  0x9b   :  { %v817_v34 = vmul.f32 %v753_v12, %v393_v6  ;;  %v755_v35 = vmax.f32 %v691_v13, 0.0  ;;  %v682_v38 = vsub.f32 1.0, %v618_v15  ;;  %v620_v11 = vand.u32 2147483647, %v556_v17  ;;  %v1216_v15 = vld [vmem:[%s2737_s3 + $0x10] sm:$0xff] }
  0x9c   :  { %v386_v44 = vmax.f32 %v322_v30, 0.0  ;;  %v324_v46 = vsub.f32 1.0, %v260_v31  ;;  %v257_v45 = vand.u32 2147483647, %v193_v22  ;;  %v553_v47 = vsub.f32 %v2242_v39, %v2162_v59  ;;  %1230 = vperm.xlu0 %1994, %v1216_v15  }
  0x9d   :  { %879 = vmatpush1.msra.mxu0 %v817_v34  ;;  %v819_v33 = vmul.f32 %v755_v35, %v395_v18  ;;  %v746_v50 = vmax.f32 %v682_v38, 0.0  ;;  %v684_v40 = vsub.f32 1.0, %v620_v11  ;;  %v195_v41 = vsub.f32 %v2238_v23, %v2158_v57 }
  0x9e   :  { %v388_v42 = vmax.f32 %v324_v46, 0.0  ;;  %v321_v48 = vsub.f32 1.0, %v257_v45  ;;  %v617_v51 = vand.u32 2147483647, %v553_v47  ;;  %v555_v52 = vsub.f32 %v2242_v39, %v2166_v61 }
  0x9f   :  { %968 = vmatpush1.msra.mxu1 %v819_v33  ;;  %v810_v14 = vmul.f32 %v746_v50, %v386_v44  ;;  %v748_v53 = vmax.f32 %v684_v40, 0.0  ;;  %v259_v6 = vand.u32 2147483647, %v195_v41  ;;  %v186_v7 = vsub.f32 %v2258_v43, %v2152_v54  ;;  %v2281_v41 = vpop.permute.xlu1 %57 }
  0xa0   :  { %v385_v8 = vmax.f32 %v321_v48, 0.0  ;;  %v681_v9 = vsub.f32 1.0, %v617_v51  ;;  %v619_v12 = vand.u32 2147483647, %v555_v52  ;;  %v546_v13 = vsub.f32 %v2262_v49, %v2160_v58 }
  0xa1   :  { %880 = vmatprep.subr.mxu0 %v810_v14  ;;  %v812_v17 = vmul.f32 %v748_v53, %v388_v42  ;;  %v323_v18 = vsub.f32 1.0, %v259_v6  ;;  %v250_v30 = vand.u32 2147483647, %v186_v7  ;;  %v188_v31 = vsub.f32 %v2258_v43, %v2154_v55  ;;  %v2285_v14 = vpop.permute.xlu0 %426 }
  0xa2   :  { %v745_v22 = vmax.f32 %v681_v9, 0.0  ;;  %v683_v34 = vsub.f32 1.0, %v619_v12  ;;  %v610_v35 = vand.u32 2147483647, %v546_v13  ;;  %v548_v38 = vsub.f32 %v2262_v49, %v2164_v60 }
  0xa3   :  { %969 = vmatprep.subr.mxu1 %v812_v17  ;;  %v387_v11 = vmax.f32 %v323_v18, 0.0  ;;  %v314_v44 = vsub.f32 1.0, %v250_v30  ;;  %v252_v46 = vand.u32 2147483647, %v188_v31  ;;  %v185_v45 = vsub.f32 %v2258_v43, %v2156_v56 }
  0xa4   :  { %v809_v47 = vmul.f32 %v745_v22, %v385_v8  ;;  %v747_v33 = vmax.f32 %v683_v34, 0.0  ;;  %v674_v50 = vsub.f32 1.0, %v610_v35  ;;  %v612_v40 = vand.u32 2147483647, %v548_v38 }
  0xa5   :  { %v378_v42 = vmax.f32 %v314_v44, 0.0  ;;  %v316_v48 = vsub.f32 1.0, %v252_v46  ;;  %v249_v51 = vand.u32 2147483647, %v185_v45  ;;  %v545_v52 = vsub.f32 %v2262_v49, %v2162_v59 }
  0xa6   :  { %881 = vmatpush1.msra.mxu0 %v809_v47  ;;  %v811_v53 = vmul.f32 %v747_v33, %v387_v11  ;;  %v738_v6 = vmax.f32 %v674_v50, 0.0  ;;  %v676_v7 = vsub.f32 1.0, %v612_v40  ;;  %v187_v8 = vsub.f32 %v2258_v43, %v2158_v57 }
  0xa7   :  { %v380_v9 = vmax.f32 %v316_v48, 0.0  ;;  %v313_v12 = vsub.f32 1.0, %v249_v51  ;;  %v609_v13 = vand.u32 2147483647, %v545_v52  ;;  %v547_v15 = vsub.f32 %v2262_v49, %v2166_v61 }
  0xa8   :  { %970 = vmatpush1.msra.mxu1 %v811_v53  ;;  %v802_v17 = vmul.f32 %v738_v6, %v378_v42  ;;  %v740_v18 = vmax.f32 %v676_v7, 0.0  ;;  %v251_v30 = vand.u32 2147483647, %v187_v8  ;;  %v178_v31 = vsub.f32 %v2281_v41, %v2152_v54 }
  0xa9   :  { %v377_v22 = vmax.f32 %v313_v12, 0.0  ;;  %v673_v34 = vsub.f32 1.0, %v609_v13  ;;  %v611_v35 = vand.u32 2147483647, %v547_v15  ;;  %v538_v38 = vsub.f32 %v2285_v14, %v2160_v58 }
  0xaa   :  { %882 = vmatprep.subr.mxu0 %v802_v17  ;;  %v804_v11 = vmul.f32 %v740_v18, %v380_v9  ;;  %v315_v44 = vsub.f32 1.0, %v251_v30  ;;  %v242_v46 = vand.u32 2147483647, %v178_v31  ;;  %v180_v45 = vsub.f32 %v2281_v41, %v2154_v55  ;;  %v2301_v9 = vpop.permute.xlu1 %52  ;;  %v2305_v18 = vpop.permute.xlu0 %422 }
  0xab   :  { %v737_v47 = vmax.f32 %v673_v34, 0.0  ;;  %v675_v33 = vsub.f32 1.0, %v611_v35  ;;  %v602_v50 = vand.u32 2147483647, %v538_v38  ;;  %v540_v40 = vsub.f32 %v2285_v14, %v2164_v60 }
  0xac   :  { %971 = vmatprep.subr.mxu1 %v804_v11  ;;  %v379_v42 = vmax.f32 %v315_v44, 0.0  ;;  %v306_v48 = vsub.f32 1.0, %v242_v46  ;;  %v244_v51 = vand.u32 2147483647, %v180_v45  ;;  %v177_v52 = vsub.f32 %v2281_v41, %v2156_v56 }
  0xad   :  { %v801_v53 = vmul.f32 %v737_v47, %v377_v22  ;;  %v739_v6 = vmax.f32 %v675_v33, 0.0  ;;  %v666_v7 = vsub.f32 1.0, %v602_v50  ;;  %v604_v8 = vand.u32 2147483647, %v540_v40 }
  0xae   :  { %v370_v12 = vmax.f32 %v306_v48, 0.0  ;;  %v308_v13 = vsub.f32 1.0, %v244_v51  ;;  %v241_v15 = vand.u32 2147483647, %v177_v52  ;;  %v537_v17 = vsub.f32 %v2285_v14, %v2162_v59 }
  0xaf   :  { %883 = vmatpush1.msra.mxu0 %v801_v53  ;;  %v803_v30 = vmul.f32 %v739_v6, %v379_v42  ;;  %v730_v31 = vmax.f32 %v666_v7, 0.0  ;;  %v668_v34 = vsub.f32 1.0, %v604_v8  ;;  %v179_v22 = vsub.f32 %v2281_v41, %v2158_v57 }
  0xb0   :  { %v372_v35 = vmax.f32 %v308_v13, 0.0  ;;  %v305_v38 = vsub.f32 1.0, %v241_v15  ;;  %v601_v11 = vand.u32 2147483647, %v537_v17  ;;  %v539_v44 = vsub.f32 %v2285_v14, %v2166_v61 }
  0xb1   :  { %972 = vmatpush1.msra.mxu1 %v803_v30  ;;  %v794_v46 = vmul.f32 %v730_v31, %v370_v12  ;;  %v732_v45 = vmax.f32 %v668_v34, 0.0  ;;  %v243_v47 = vand.u32 2147483647, %v179_v22  ;;  %v170_v33 = vsub.f32 %v2301_v9, %v2152_v54 }
  0xb2   :  { %v369_v50 = vmax.f32 %v305_v38, 0.0  ;;  %v665_v40 = vsub.f32 1.0, %v601_v11  ;;  %v603_v42 = vand.u32 2147483647, %v539_v44  ;;  %v530_v48 = vsub.f32 %v2305_v18, %v2160_v58  ;;  %v2321_v11 = vpop.permute.xlu1 %47 }
  0xb3   :  { %884 = vmatprep.subr.mxu0 %v794_v46  ;;  %v796_v51 = vmul.f32 %v732_v45, %v372_v35  ;;  %v307_v52 = vsub.f32 1.0, %v243_v47  ;;  %v234_v53 = vand.u32 2147483647, %v170_v33  ;;  %v172_v6 = vsub.f32 %v2301_v9, %v2154_v55  ;;  %v2325_v33 = vpop.permute.xlu0 %418 }
  0xb4   :  { %v729_v7 = vmax.f32 %v665_v40, 0.0  ;;  %v667_v8 = vsub.f32 1.0, %v603_v42  ;;  %v594_v12 = vand.u32 2147483647, %v530_v48  ;;  %v532_v13 = vsub.f32 %v2305_v18, %v2164_v60 }
  0xb5   :  { %973 = vmatprep.subr.mxu1 %v796_v51  ;;  %v371_v15 = vmax.f32 %v307_v52, 0.0  ;;  %v298_v17 = vsub.f32 1.0, %v234_v53  ;;  %v236_v30 = vand.u32 2147483647, %v172_v6  ;;  %v169_v31 = vsub.f32 %v2301_v9, %v2156_v56 }
  0xb6   :  { %v793_v34 = vmul.f32 %v729_v7, %v369_v50  ;;  %v731_v22 = vmax.f32 %v667_v8, 0.0  ;;  %v658_v35 = vsub.f32 1.0, %v594_v12  ;;  %v596_v38 = vand.u32 2147483647, %v532_v13 }
  0xb7   :  { %v362_v44 = vmax.f32 %v298_v17, 0.0  ;;  %v300_v46 = vsub.f32 1.0, %v236_v30  ;;  %v233_v45 = vand.u32 2147483647, %v169_v31  ;;  %v529_v47 = vsub.f32 %v2305_v18, %v2162_v59 }
  0xb8   :  { %885 = vmatpush1.msra.mxu0 %v793_v34  ;;  %v795_v40 = vmul.f32 %v731_v22, %v371_v15  ;;  %v722_v42 = vmax.f32 %v658_v35, 0.0  ;;  %v660_v48 = vsub.f32 1.0, %v596_v38  ;;  %v171_v50 = vsub.f32 %v2301_v9, %v2158_v57 }
  0xb9   :  { %v364_v51 = vmax.f32 %v300_v46, 0.0  ;;  %v297_v52 = vsub.f32 1.0, %v233_v45  ;;  %v593_v53 = vand.u32 2147483647, %v529_v47  ;;  %v531_v6 = vsub.f32 %v2305_v18, %v2166_v61 }
  0xba   :  { %974 = vmatpush1.msra.mxu1 %v795_v40  ;;  %v786_v7 = vmul.f32 %v722_v42, %v362_v44  ;;  %v724_v8 = vmax.f32 %v660_v48, 0.0  ;;  %v235_v12 = vand.u32 2147483647, %v171_v50  ;;  %v162_v13 = vsub.f32 %v2321_v11, %v2152_v54 }
  0xbb   :  { %v361_v17 = vmax.f32 %v297_v52, 0.0  ;;  %v657_v15 = vsub.f32 1.0, %v593_v53  ;;  %v595_v30 = vand.u32 2147483647, %v531_v6  ;;  %v522_v31 = vsub.f32 %v2325_v33, %v2160_v58 }
  0xbc   :  { %886 = vmatprep.subr.mxu0 %v786_v7  ;;  %v788_v34 = vmul.f32 %v724_v8, %v364_v51  ;;  %v299_v22 = vsub.f32 1.0, %v235_v12  ;;  %v226_v35 = vand.u32 2147483647, %v162_v13  ;;  %v164_v38 = vsub.f32 %v2321_v11, %v2154_v55 }
  0xbd   :  { %v721_v46 = vmax.f32 %v657_v15, 0.0  ;;  %v659_v44 = vsub.f32 1.0, %v595_v30  ;;  %v586_v45 = vand.u32 2147483647, %v522_v31  ;;  %v524_v47 = vsub.f32 %v2325_v33, %v2164_v60 }
  0xbe   :  { %975 = vmatprep.subr.mxu1 %v788_v34  ;;  %v363_v54 = vmax.f32 %v299_v22, 0.0  ;;  %v290_v40 = vsub.f32 1.0, %v226_v35  ;;  %v228_v42 = vand.u32 2147483647, %v164_v38  ;;  %v161_v58 = vsub.f32 %v2321_v11, %v2156_v56 }
  0xbf   :  { %v785_v48 = vmul.f32 %v721_v46, %v361_v17  ;;  %v723_v50 = vmax.f32 %v659_v44, 0.0  ;;  %v650_v51 = vsub.f32 1.0, %v586_v45  ;;  %v588_v52 = vand.u32 2147483647, %v524_v47 }
  0xc0   :  { %v354_v53 = vmax.f32 %v290_v40, 0.0  ;;  %v292_v6 = vsub.f32 1.0, %v228_v42  ;;  %v225_v55 = vand.u32 2147483647, %v161_v58  ;;  %v521_v7 = vsub.f32 %v2325_v33, %v2162_v59 }
  0xc1   :  { %887 = vmatpush1.msra.mxu0 %v785_v48  ;;  %v787_v60 = vmul.f32 %v723_v50, %v363_v54  ;;  %v714_v8 = vmax.f32 %v650_v51, 0.0  ;;  %v652_v12 = vsub.f32 1.0, %v588_v52  ;;  %v163_v13 = vsub.f32 %v2321_v11, %v2158_v57 }
  0xc2   :  { %v356_v15 = vmax.f32 %v292_v6, 0.0  ;;  %v289_v56 = vsub.f32 1.0, %v225_v55  ;;  %v585_v17 = vand.u32 2147483647, %v521_v7  ;;  %v523_v30 = vsub.f32 %v2325_v33, %v2166_v61  ;;  %v2362_v6 = vld [vmem:[%s2735_s1] sm:$0xff] }
  0xc3   :  { %976 = vmatpush1.msra.mxu1 %v787_v60  ;;  %v778_v31 = vmul.f32 %v714_v8, %v354_v53  ;;  %v716_v34 = vmax.f32 %v652_v12, 0.0  ;;  %v227_v22 = vand.u32 2147483647, %v163_v13  ;;  %v286_v59 = vand.u32 2147483647, %v222_v19 }
  0xc4   :  { %v353_v35 = vmax.f32 %v289_v56, 0.0  ;;  %v649_v38 = vsub.f32 1.0, %v585_v17  ;;  %v587_v46 = vand.u32 2147483647, %v523_v30  ;;  %v582_v57 = vsub.f32 %v2204_v25, %v2168_v62 }
  0xc5   :  { %888 = vmatprep.subr.mxu0 %v778_v31  ;;  %v780_v44 = vmul.f32 %v716_v34, %v356_v15  ;;  %v291_v45 = vsub.f32 1.0, %v227_v22  ;;  %v350_v47 = vsub.f32 1.0, %v286_v59  ;;  %v288_v61 = vand.u32 2147483647, %v224_v24 }
  0xc6   :  { %v713_v54 = vmax.f32 %v649_v38, 0.0  ;;  %v651_v40 = vsub.f32 1.0, %v587_v46  ;;  %v646_v42 = vand.u32 2147483647, %v582_v57  ;;  %v584_v19 = vsub.f32 %v2204_v25, %v2176_v2 }
  0xc7   :  { %977 = vmatprep.subr.mxu1 %v780_v44  ;;  %v355_v58 = vmax.f32 %v291_v45, 0.0  ;;  %v414_v48 = vmax.f32 %v350_v47, 0.0  ;;  %v352_v50 = vsub.f32 1.0, %v288_v61  ;;  %v221_v51 = vsub.f32 %v2174_v1, %v2170_v63 }
  0xc8   :  { %v777_v52 = vmul.f32 %v713_v54, %v353_v35  ;;  %v715_v53 = vmax.f32 %v651_v40, 0.0  ;;  %v710_v24 = vsub.f32 1.0, %v646_v42  ;;  %v648_v55 = vand.u32 2147483647, %v584_v19 }
  0xc9   :  { %v416_v7 = vmax.f32 %v352_v50, 0.0  ;;  %v285_v60 = vand.u32 2147483647, %v221_v51  ;;  %v581_v8 = vsub.f32 %v2204_v25, %v2178_v3  ;;  %v223_v12 = vsub.f32 %v2174_v1, %v2180_v4 }
  0xca   :  { %889 = vmatpush1.msra.mxu0 %v777_v52  ;;  %v779_v13 = vmul.f32 %v715_v53, %v355_v58  ;;  %v774_v15 = vmax.f32 %v710_v24, 0.0  ;;  %v712_v56 = vsub.f32 1.0, %v648_v55  ;;  %v583_v17 = vsub.f32 %v2204_v25, %v2182_v5  ;;  %v2380_v25 = vld [vmem:[%s2735_s1 + $0x8] sm:$0xff] }
  0xcb   :  { %1957 = vmatmul.mubr.msk.f32.vlgmr.msra.gmra.mxu0 %vm845_vm0, %v2362_v6  ;;  %v349_v30 = vsub.f32 1.0, %v285_v60  ;;  %v645_v31 = vand.u32 2147483647, %v581_v8  ;;  %v287_v34 = vand.u32 2147483647, %v223_v12  ;;  %v214_v22 = vsub.f32 %v2172_v0, %v2108_v20  ;;  %v2401_v8 = vld [vmem:[%s2735_s1 + $0x10] sm:$0xff] }
  0xcc   :  { %978 = vmatpush1.msra.mxu1 %v779_v13  ;;  %v838_v59 = vmul.f32 %v774_v15, %v414_v48  ;;  %v776_v35 = vmax.f32 %v712_v56, 0.0  ;;  %v647_v1 = vand.u32 2147483647, %v583_v17  ;;  %v574_v38 = vsub.f32 %v2206_v27, %v2168_v62  ;;  %928 = vmatprep.mubr.f32.mxu0 %v2039_v29 }
  0xcd   :  { %1961 = vmatmul.mubr.msk.f32.vlgmr.msra.gmra.mxu1 %vm845_vm0, %v2362_v6  ;;  %v413_v46 = vmax.f32 %v349_v30, 0.0  ;;  %v709_v57 = vsub.f32 1.0, %v645_v31  ;;  %v351_v44 = vsub.f32 1.0, %v287_v34  ;;  %v278_v45 = vand.u32 2147483647, %v214_v22 }
  0xce   :  { %1052 = vmatprep.subr.mxu0 %v838_v59  ;;  %v840_v47 = vmul.f32 %v776_v35, %v416_v7  ;;  %v711_v61 = vsub.f32 1.0, %v647_v1  ;;  %v638_v54 = vand.u32 2147483647, %v574_v38  ;;  %v216_v40 = vsub.f32 %v2172_v0, %v2122_v28  ;;  %1017 = vmatprep.mubr.f32.mxu1 %v2039_v29  ;;  %v2415_v38 = vld [vmem:[%s2735_s1 + $0x18] sm:$0xff] }
  0xcf   :  { %v773_v42 = vmax.f32 %v709_v57, 0.0  ;;  %v415_v19 = vmax.f32 %v351_v44, 0.0  ;;  %v342_v58 = vsub.f32 1.0, %v278_v45  ;;  %v576_v48 = vsub.f32 %v2206_v27, %v2176_v2  ;;  %1958 = vmatmul.mubr.msk.f32.gmra.mxu0 %vm845_vm0, %v2380_v25 }
  0xd0   :  { %1141 = vmatprep.subr.mxu1 %v840_v47  ;;  %v775_v50 = vmax.f32 %v711_v61, 0.0  ;;  %v702_v51 = vsub.f32 1.0, %v638_v54  ;;  %v280_v52 = vand.u32 2147483647, %v216_v40  ;;  %v213_v53 = vsub.f32 %v2172_v0, %v2170_v63  ;;  %934 = vmatprep.mubr.f32.mxu0 %v2039_v29 }
  0xd1   :  { %v837_v24 = vmul.f32 %v773_v42, %v413_v46  ;;  %v406_v55 = vmax.f32 %v342_v58, 0.0  ;;  %v640_v7 = vand.u32 2147483647, %v576_v48  ;;  %v573_v60 = vsub.f32 %v2206_v27, %v2178_v3  ;;  %1962 = vmatmul.mubr.msk.f32.gmra.mxu1 %vm845_vm0, %v2380_v25 }
  0xd2   :  { %v839_v12 = vmul.f32 %v775_v50, %v415_v19  ;;  %v766_v13 = vmax.f32 %v702_v51, 0.0  ;;  %v344_v15 = vsub.f32 1.0, %v280_v52  ;;  %v277_v56 = vand.u32 2147483647, %v213_v53  ;;  %1023 = vmatprep.mubr.f32.mxu1 %v2039_v29 }
  0xd3   :  { %1053 = vmatpush1.msra.mxu0 %v837_v24  ;;  %v704_v17 = vsub.f32 1.0, %v640_v7  ;;  %v637_v30 = vand.u32 2147483647, %v573_v60  ;;  %v215_v31 = vsub.f32 %v2172_v0, %v2180_v4  ;;  %v575_v34 = vsub.f32 %v2206_v27, %v2182_v5 }
  0xd4   :  { %1142 = vmatpush1.msra.mxu1 %v839_v12  ;;  %v830_v22 = vmul.f32 %v766_v13, %v406_v55  ;;  %v408_v59 = vmax.f32 %v344_v15, 0.0  ;;  %v341_v35 = vsub.f32 1.0, %v277_v56  ;;  %v206_v1 = vsub.f32 %v2220_v21, %v2108_v20  ;;  %1959 = vmatmul.mubr.msk.f32.gmra.mxu0 %vm845_vm0, %v2401_v8 }
  0xd5   :  { %v768_v46 = vmax.f32 %v704_v17, 0.0  ;;  %v701_v0 = vsub.f32 1.0, %v637_v30  ;;  %v279_v57 = vand.u32 2147483647, %v215_v31  ;;  %v639_v44 = vand.u32 2147483647, %v575_v34  ;;  %1963 = vmatmul.mubr.msk.f32.gmra.mxu1 %vm845_vm0, %v2401_v8  ;;  %940 = vmatprep.mubr.f32.mxu0 %v2039_v29 }
  0xd6   :  { %1054 = vmatprep.subr.mxu0 %v830_v22  ;;  %v405_v27 = vmax.f32 %v341_v35, 0.0  ;;  %v270_v45 = vand.u32 2147483647, %v206_v1  ;;  %v566_v47 = vsub.f32 %v2224_v32, %v2168_v62  ;;  %v208_v61 = vsub.f32 %v2220_v21, %v2122_v28  ;;  %1029 = vmatprep.mubr.f32.mxu1 %v2039_v29 }
  0xd7   :  { %v832_v54 = vmul.f32 %v768_v46, %v408_v59  ;;  %v765_v40 = vmax.f32 %v701_v0, 0.0  ;;  %v343_v42 = vsub.f32 1.0, %v279_v57  ;;  %v703_v19 = vsub.f32 1.0, %v639_v44 }
  0xd8   :  { %v334_v58 = vsub.f32 1.0, %v270_v45  ;;  %v630_v48 = vand.u32 2147483647, %v566_v47  ;;  %v272_v50 = vand.u32 2147483647, %v208_v61  ;;  %v568_v51 = vsub.f32 %v2224_v32, %v2176_v2  ;;  %1960 = vmatmul.mubr.msk.f32.gmra.mxu0 %vm845_vm0, %v2415_v38 }
  0xd9   :  { %1143 = vmatprep.subr.mxu1 %v832_v54  ;;  %v829_v52 = vmul.f32 %v765_v40, %v405_v27  ;;  %v407_v53 = vmax.f32 %v343_v42, 0.0  ;;  %v767_v24 = vmax.f32 %v703_v19, 0.0  ;;  %v205_v55 = vsub.f32 %v2220_v21, %v2170_v63  ;;  %1964 = vmatmul.mubr.msk.f32.gmra.mxu1 %vm845_vm0, %v2415_v38 }
  0xda   :  { %v398_v7 = vmax.f32 %v334_v58, 0.0  ;;  %v694_v60 = vsub.f32 1.0, %v630_v48  ;;  %v336_v12 = vsub.f32 1.0, %v272_v50  ;;  %v632_v13 = vand.u32 2147483647, %v568_v51  ;;  %1100 = vmatprep.mubr.f32.mxu0 %v2039_v29  ;;  %1189 = vmatprep.mubr.f32.mxu1 %v2039_v29 }
  0xdb   :  { %1055 = vmatpush1.msra.mxu0 %v829_v52  ;;  %v831_v15 = vmul.f32 %v767_v24, %v407_v53  ;;  %v269_v56 = vand.u32 2147483647, %v205_v55  ;;  %v565_v17 = vsub.f32 %v2224_v32, %v2178_v3  ;;  %v207_v30 = vsub.f32 %v2220_v21, %v2180_v4 }
  0xdc   :  { %v758_v31 = vmax.f32 %v694_v60, 0.0  ;;  %v400_v34 = vmax.f32 %v336_v12, 0.0  ;;  %v696_v22 = vsub.f32 1.0, %v632_v13  ;;  %v567_v59 = vsub.f32 %v2224_v32, %v2182_v5 }
  0xdd   :  { %1144 = vmatpush1.msra.mxu1 %v831_v15  ;;  %v333_v35 = vsub.f32 1.0, %v269_v56  ;;  %v629_v1 = vand.u32 2147483647, %v565_v17  ;;  %v271_v46 = vand.u32 2147483647, %v207_v30  ;;  %v198_v0 = vsub.f32 %v2238_v23, %v2108_v20 }
  0xde   :  { %v822_v57 = vmul.f32 %v758_v31, %v398_v7  ;;  %v760_v44 = vmax.f32 %v696_v22, 0.0  ;;  %v631_v27 = vand.u32 2147483647, %v567_v59  ;;  %v558_v45 = vsub.f32 %v2242_v39, %v2168_v62 }
  0xdf   :  { %v397_v21 = vmax.f32 %v333_v35, 0.0  ;;  %v693_v47 = vsub.f32 1.0, %v629_v1  ;;  %v335_v61 = vsub.f32 1.0, %v271_v46  ;;  %v262_v54 = vand.u32 2147483647, %v198_v0 }
  0xe0   :  { %1056 = vmatprep.subr.mxu0 %v822_v57  ;;  %v824_v40 = vmul.f32 %v760_v44, %v400_v34  ;;  %v695_v32 = vsub.f32 1.0, %v631_v27  ;;  %v622_v42 = vand.u32 2147483647, %v558_v45  ;;  %v200_v19 = vsub.f32 %v2238_v23, %v2122_v28 }
  0xe1   :  { %v757_v58 = vmax.f32 %v693_v47, 0.0  ;;  %v399_v48 = vmax.f32 %v335_v61, 0.0  ;;  %v326_v50 = vsub.f32 1.0, %v262_v54  ;;  %v560_v51 = vsub.f32 %v2242_v39, %v2176_v2 }
  0xe2   :  { %1145 = vmatprep.subr.mxu1 %v824_v40  ;;  %v759_v52 = vmax.f32 %v695_v32, 0.0  ;;  %v686_v53 = vsub.f32 1.0, %v622_v42  ;;  %v264_v24 = vand.u32 2147483647, %v200_v19  ;;  %v197_v55 = vsub.f32 %v2238_v23, %v2170_v63 }
  0xe3   :  { %v821_v7 = vmul.f32 %v757_v58, %v397_v21  ;;  %v390_v60 = vmax.f32 %v326_v50, 0.0  ;;  %v624_v12 = vand.u32 2147483647, %v560_v51  ;;  %v557_v13 = vsub.f32 %v2242_v39, %v2178_v3 }
  0xe4   :  { %v823_v15 = vmul.f32 %v759_v52, %v399_v48  ;;  %v750_v56 = vmax.f32 %v686_v53, 0.0  ;;  %v328_v17 = vsub.f32 1.0, %v264_v24  ;;  %v261_v30 = vand.u32 2147483647, %v197_v55 }
  0xe5   :  { %1057 = vmatpush1.msra.mxu0 %v821_v7  ;;  %v688_v31 = vsub.f32 1.0, %v624_v12  ;;  %v621_v34 = vand.u32 2147483647, %v557_v13  ;;  %v199_v22 = vsub.f32 %v2238_v23, %v2180_v4  ;;  %v559_v59 = vsub.f32 %v2242_v39, %v2182_v5 }
  0xe6   :  { %1146 = vmatpush1.msra.mxu1 %v823_v15  ;;  %v814_v35 = vmul.f32 %v750_v56, %v390_v60  ;;  %v392_v1 = vmax.f32 %v328_v17, 0.0  ;;  %v325_v46 = vsub.f32 1.0, %v261_v30  ;;  %v190_v0 = vsub.f32 %v2258_v43, %v2108_v20 }
  0xe7   :  { %v752_v57 = vmax.f32 %v688_v31, 0.0  ;;  %v685_v44 = vsub.f32 1.0, %v621_v34  ;;  %v263_v27 = vand.u32 2147483647, %v199_v22  ;;  %v623_v45 = vand.u32 2147483647, %v559_v59 }
  0xe8   :  { %1058 = vmatprep.subr.mxu0 %v814_v35  ;;  %v389_v21 = vmax.f32 %v325_v46, 0.0  ;;  %v254_v47 = vand.u32 2147483647, %v190_v0  ;;  %v550_v23 = vsub.f32 %v2262_v49, %v2168_v62  ;;  %v192_v39 = vsub.f32 %v2258_v43, %v2122_v28 }
  0xe9   :  { %v816_v61 = vmul.f32 %v752_v57, %v392_v1  ;;  %v749_v54 = vmax.f32 %v685_v44, 0.0  ;;  %v327_v40 = vsub.f32 1.0, %v263_v27  ;;  %v687_v32 = vsub.f32 1.0, %v623_v45 }
  0xea   :  { %v318_v42 = vsub.f32 1.0, %v254_v47  ;;  %v614_v19 = vand.u32 2147483647, %v550_v23  ;;  %v256_v58 = vand.u32 2147483647, %v192_v39  ;;  %v552_v48 = vsub.f32 %v2262_v49, %v2176_v2 }
  0xeb   :  { %1147 = vmatprep.subr.mxu1 %v816_v61  ;;  %v813_v50 = vmul.f32 %v749_v54, %v389_v21  ;;  %v391_v51 = vmax.f32 %v327_v40, 0.0  ;;  %v751_v52 = vmax.f32 %v687_v32, 0.0  ;;  %v189_v53 = vsub.f32 %v2258_v43, %v2170_v63 }
  0xec   :  { %v382_v24 = vmax.f32 %v318_v42, 0.0  ;;  %v678_v55 = vsub.f32 1.0, %v614_v19  ;;  %v320_v7 = vsub.f32 1.0, %v256_v58  ;;  %v616_v60 = vand.u32 2147483647, %v552_v48 }
  0xed   :  { %1059 = vmatpush1.msra.mxu0 %v813_v50  ;;  %v815_v12 = vmul.f32 %v751_v52, %v391_v51  ;;  %v253_v13 = vand.u32 2147483647, %v189_v53  ;;  %v549_v15 = vsub.f32 %v2262_v49, %v2178_v3  ;;  %v191_v56 = vsub.f32 %v2258_v43, %v2180_v4 }
  0xee   :  { %v742_v17 = vmax.f32 %v678_v55, 0.0  ;;  %v384_v30 = vmax.f32 %v320_v7, 0.0  ;;  %v680_v31 = vsub.f32 1.0, %v616_v60  ;;  %v551_v34 = vsub.f32 %v2262_v49, %v2182_v5 }
  0xef   :  { %1148 = vmatpush1.msra.mxu1 %v815_v12  ;;  %v317_v22 = vsub.f32 1.0, %v253_v13  ;;  %v613_v59 = vand.u32 2147483647, %v549_v15  ;;  %v255_v35 = vand.u32 2147483647, %v191_v56  ;;  %v182_v1 = vsub.f32 %v2281_v41, %v2108_v20 }
  0xf0   :  { %v806_v46 = vmul.f32 %v742_v17, %v382_v24  ;;  %v744_v0 = vmax.f32 %v680_v31, 0.0  ;;  %v615_v57 = vand.u32 2147483647, %v551_v34  ;;  %v542_v44 = vsub.f32 %v2285_v14, %v2168_v62 }
  0xf1   :  { %v381_v43 = vmax.f32 %v317_v22, 0.0  ;;  %v677_v27 = vsub.f32 1.0, %v613_v59  ;;  %v319_v45 = vsub.f32 1.0, %v255_v35  ;;  %v246_v21 = vand.u32 2147483647, %v182_v1 }
  0xf2   :  { %1060 = vmatprep.subr.mxu0 %v806_v46  ;;  %v808_v47 = vmul.f32 %v744_v0, %v384_v30  ;;  %v679_v49 = vsub.f32 1.0, %v615_v57  ;;  %v606_v23 = vand.u32 2147483647, %v542_v44  ;;  %v184_v39 = vsub.f32 %v2281_v41, %v2122_v28 }
  0xf3   :  { %v741_v61 = vmax.f32 %v677_v27, 0.0  ;;  %v383_v54 = vmax.f32 %v319_v45, 0.0  ;;  %v310_v40 = vsub.f32 1.0, %v246_v21  ;;  %v544_v32 = vsub.f32 %v2285_v14, %v2176_v2 }
  0xf4   :  { %1149 = vmatprep.subr.mxu1 %v808_v47  ;;  %v743_v42 = vmax.f32 %v679_v49, 0.0  ;;  %v670_v19 = vsub.f32 1.0, %v606_v23  ;;  %v248_v58 = vand.u32 2147483647, %v184_v39  ;;  %v181_v48 = vsub.f32 %v2281_v41, %v2170_v63 }
  0xf5   :  { %v805_v50 = vmul.f32 %v741_v61, %v381_v43  ;;  %v374_v51 = vmax.f32 %v310_v40, 0.0  ;;  %v608_v52 = vand.u32 2147483647, %v544_v32  ;;  %v541_v53 = vsub.f32 %v2285_v14, %v2178_v3 }
  0xf6   :  { %v807_v24 = vmul.f32 %v743_v42, %v383_v54  ;;  %v734_v55 = vmax.f32 %v670_v19, 0.0  ;;  %v312_v7 = vsub.f32 1.0, %v248_v58  ;;  %v245_v60 = vand.u32 2147483647, %v181_v48 }
  0xf7   :  { %1061 = vmatpush1.msra.mxu0 %v805_v50  ;;  %v672_v12 = vsub.f32 1.0, %v608_v52  ;;  %v605_v13 = vand.u32 2147483647, %v541_v53  ;;  %v183_v15 = vsub.f32 %v2281_v41, %v2180_v4  ;;  %v543_v56 = vsub.f32 %v2285_v14, %v2182_v5 }
  0xf8   :  { %1150 = vmatpush1.msra.mxu1 %v807_v24  ;;  %v798_v17 = vmul.f32 %v734_v55, %v374_v51  ;;  %v376_v30 = vmax.f32 %v312_v7, 0.0  ;;  %v309_v31 = vsub.f32 1.0, %v245_v60  ;;  %v174_v34 = vsub.f32 %v2301_v9, %v2108_v20 }
  0xf9   :  { %v736_v22 = vmax.f32 %v672_v12, 0.0  ;;  %v669_v59 = vsub.f32 1.0, %v605_v13  ;;  %v247_v35 = vand.u32 2147483647, %v183_v15  ;;  %v607_v1 = vand.u32 2147483647, %v543_v56 }
  0xfa   :  { %1062 = vmatprep.subr.mxu0 %v798_v17  ;;  %v373_v46 = vmax.f32 %v309_v31, 0.0  ;;  %v238_v0 = vand.u32 2147483647, %v174_v34  ;;  %v534_v41 = vsub.f32 %v2305_v18, %v2168_v62  ;;  %v176_v14 = vsub.f32 %v2301_v9, %v2122_v28 }
  0xfb   :  { %v800_v57 = vmul.f32 %v736_v22, %v376_v30  ;;  %v733_v44 = vmax.f32 %v669_v59, 0.0  ;;  %v311_v43 = vsub.f32 1.0, %v247_v35  ;;  %v671_v27 = vsub.f32 1.0, %v607_v1 }
  0xfc   :  { %v302_v45 = vsub.f32 1.0, %v238_v0  ;;  %v598_v21 = vand.u32 2147483647, %v534_v41  ;;  %v240_v47 = vand.u32 2147483647, %v176_v14  ;;  %v536_v49 = vsub.f32 %v2305_v18, %v2176_v2 }
  0xfd   :  { %1151 = vmatprep.subr.mxu1 %v800_v57  ;;  %v797_v23 = vmul.f32 %v733_v44, %v373_v46  ;;  %v375_v39 = vmax.f32 %v311_v43, 0.0  ;;  %v735_v61 = vmax.f32 %v671_v27, 0.0  ;;  %v173_v54 = vsub.f32 %v2301_v9, %v2170_v63 }
  0xfe   :  { %v366_v40 = vmax.f32 %v302_v45, 0.0  ;;  %v662_v32 = vsub.f32 1.0, %v598_v21  ;;  %v304_v42 = vsub.f32 1.0, %v240_v47  ;;  %v600_v19 = vand.u32 2147483647, %v536_v49 }
  0xff   :  { %1063 = vmatpush1.msra.mxu0 %v797_v23  ;;  %v799_v58 = vmul.f32 %v735_v61, %v375_v39  ;;  %v237_v48 = vand.u32 2147483647, %v173_v54  ;;  %v533_v50 = vsub.f32 %v2305_v18, %v2178_v3  ;;  %v175_v51 = vsub.f32 %v2301_v9, %v2180_v4 }
 0x100   :  { %v726_v52 = vmax.f32 %v662_v32, 0.0  ;;  %v368_v53 = vmax.f32 %v304_v42, 0.0  ;;  %v664_v24 = vsub.f32 1.0, %v600_v19  ;;  %v535_v55 = vsub.f32 %v2305_v18, %v2182_v5 }
 0x101   :  { %1152 = vmatpush1.msra.mxu1 %v799_v58  ;;  %v301_v7 = vsub.f32 1.0, %v237_v48  ;;  %v597_v60 = vand.u32 2147483647, %v533_v50  ;;  %v239_v12 = vand.u32 2147483647, %v175_v51  ;;  %v166_v13 = vsub.f32 %v2321_v11, %v2108_v20  ;;  %v2521_v50 = vpop.permute.xlu1 %1235 }
 0x102   :  { %v790_v15 = vmul.f32 %v726_v52, %v366_v40  ;;  %v728_v56 = vmax.f32 %v664_v24, 0.0  ;;  %v599_v17 = vand.u32 2147483647, %v535_v55  ;;  %v526_v30 = vsub.f32 %v2325_v33, %v2168_v62 }
 0x103   :  { %v365_v9 = vmax.f32 %v301_v7, 0.0  ;;  %v661_v31 = vsub.f32 1.0, %v597_v60  ;;  %v303_v34 = vsub.f32 1.0, %v239_v12  ;;  %v230_v22 = vand.u32 2147483647, %v166_v13 }
 0x104   :  { %1064 = vmatprep.subr.mxu0 %v790_v15  ;;  %v792_v59 = vmul.f32 %v728_v56, %v368_v53  ;;  %v663_v18 = vsub.f32 1.0, %v599_v17  ;;  %v590_v35 = vand.u32 2147483647, %v526_v30  ;;  %v168_v1 = vsub.f32 %v2321_v11, %v2122_v28 }
 0x105   :  { %v725_v46 = vmax.f32 %v661_v31, 0.0  ;;  %v367_v0 = vmax.f32 %v303_v34, 0.0  ;;  %v294_v20 = vsub.f32 1.0, %v230_v22  ;;  %v528_v41 = vsub.f32 %v2325_v33, %v2176_v2  ;;  %v2526_v7 = vpop.permute.xlu1 %1225 }
 0x106   :  { %1153 = vmatprep.subr.mxu1 %v792_v59  ;;  %v727_v14 = vmax.f32 %v663_v18, 0.0  ;;  %v654_v62 = vsub.f32 1.0, %v590_v35  ;;  %v232_v57 = vand.u32 2147483647, %v168_v1  ;;  %v165_v44 = vsub.f32 %v2321_v11, %v2170_v63 }
 0x107   :  { %v789_v43 = vmul.f32 %v725_v46, %v365_v9  ;;  %v358_v27 = vmax.f32 %v294_v20, 0.0  ;;  %v592_v45 = vand.u32 2147483647, %v528_v41  ;;  %v525_v21 = vsub.f32 %v2325_v33, %v2178_v3 }
 0x108   :  { %v791_v28 = vmul.f32 %v727_v14, %v367_v0  ;;  %v718_v47 = vmax.f32 %v654_v62, 0.0  ;;  %v296_v49 = vsub.f32 1.0, %v232_v57  ;;  %v229_v23 = vand.u32 2147483647, %v165_v44 }
 0x109   :  { %1065 = vmatpush1.msra.mxu0 %v789_v43  ;;  %v656_v39 = vsub.f32 1.0, %v592_v45  ;;  %v589_v2 = vand.u32 2147483647, %v525_v21  ;;  %v167_v61 = vsub.f32 %v2321_v11, %v2180_v4  ;;  %v527_v54 = vsub.f32 %v2325_v33, %v2182_v5  ;;  %v2538_v12 = vpop.permute.xlu1 %1220 }
 0x10a   :  { %1154 = vmatpush1.msra.mxu1 %v791_v28  ;;  %v782_v63 = vmul.f32 %v718_v47, %v358_v27  ;;  %v360_v40 = vmax.f32 %v296_v49, 0.0  ;;  %v293_v32 = vsub.f32 1.0, %v229_v23  ;;  %v1240_v55 = vsub.s32 2, %v2092_v10 }
 0x10b   :  { %v720_v42 = vmax.f32 %v656_v39, 0.0  ;;  %v653_v19 = vsub.f32 1.0, %v589_v2  ;;  %v231_v3 = vand.u32 2147483647, %v167_v61  ;;  %v591_v58 = vand.u32 2147483647, %v527_v54 }
 0x10c   :  { %1066 = vmatprep.subr.mxu0 %v782_v63  ;;  %v357_v48 = vmax.f32 %v293_v32, 0.0  ;;  %v1257_v60 = vrot.slane %v2101_v16, %v1240_v55  ;;  %v1265_v15 = vrot.slane %v2119_v26, %v1240_v55 }
 0x10d   :  { %v784_v51 = vmul.f32 %v720_v42, %v360_v40  ;;  %v717_v52 = vmax.f32 %v653_v19, 0.0  ;;  %v295_v53 = vsub.f32 1.0, %v231_v3  ;;  %v655_v24 = vsub.f32 1.0, %v591_v58 }
 0x10e   :  { %v2544_v13 = vrot.slane %v1257_v60, %v1240_v55  ;;  %v2553_v56 = vrot.slane %v1265_v15, %v1240_v55 }
 0x10f   :  { %1155 = vmatprep.subr.mxu1 %v784_v51  ;;  %v781_v4 = vmul.f32 %v717_v52, %v357_v48  ;;  %v359_v11 = vmax.f32 %v295_v53, 0.0  ;;  %v719_v5 = vmax.f32 %v655_v24, 0.0 }
 0x110   :  { %v1316_v9 = vsub.f32 %v2538_v12, %v2553_v56 }
 0x111   :  { %1067 = vmatpush1.msra.mxu0 %v781_v4  ;;  %v783_v33 = vmul.f32 %v719_v5, %v359_v11 }
 0x112   :  { %1965 = vmatmul.mubr.msk.f32.vlgmr.msra.gmra.mxu0 %vm845_vm0, %v2362_v6 }
 0x113   :  { %1156 = vmatpush1.msra.mxu1 %v783_v33  ;;  %1106 = vmatprep.mubr.f32.mxu0 %v2039_v29 }
 0x114   :  { %1969 = vmatmul.mubr.msk.f32.vlgmr.msra.gmra.mxu1 %vm845_vm0, %v2362_v6  ;;  %v1244_v6 = vsub.s32 6, %v2092_v10 }
 0x115   :  { %1195 = vmatprep.mubr.f32.mxu1 %v2039_v29 }
 0x116   :  { %1966 = vmatmul.mubr.msk.f32.gmra.mxu0 %vm845_vm0, %v2380_v25  ;;  %v1261_v17 = vrot.slane %v2101_v16, %v1244_v6  ;;  %v1269_v30 = vrot.slane %v2119_v26, %v1244_v6  ;;  %v1241_v26 = vrot.slane %v2132_v36, %v1240_v55  ;;  %v1245_v22 = vrot.slane %v2132_v36, %v1244_v6 }
 0x117   :  { %1112 = vmatprep.mubr.f32.mxu0 %v2039_v29  ;;  %v1253_v59 = vrot.slane %v2134_v37, %v1244_v6  ;;  %v2579_v20 = vpop.permute.xlu0 %1230 }
 0x118   :  { %1970 = vmatmul.mubr.msk.f32.gmra.mxu1 %vm845_vm0, %v2380_v25  ;;  %v1314_v25 = vsub.f32 %v2538_v12, %v2544_v13  ;;  %v2567_v31 = vrot.slane %v1269_v30, %v1240_v55  ;;  %v1281_v18 = vrot.slane %v1241_v26, %v1240_v55  ;;  %v1285_v35 = vrot.slane %v1245_v22, %v1240_v55 }
 0x119   :  { %1201 = vmatprep.mubr.f32.mxu1 %v2039_v29  ;;  %v1293_v1 = vrot.slane %v1253_v59, %v1240_v55 }
 0x11a   :  { %1967 = vmatmul.mubr.msk.f32.gmra.mxu0 %vm845_vm0, %v2401_v8  ;;  %v1317_v16 = vsub.f32 %v2538_v12, %v2567_v31  ;;  %v1327_v62 = vsub.f32 %v2579_v20, %v1285_v35  ;;  %v1334_v36 = vsub.f32 %v2521_v50, %v1281_v18  ;;  %v1335_v57 = vsub.f32 %v2521_v50, %v1285_v35 }
 0x11b   :  { %1118 = vmatprep.mubr.f32.mxu0 %v2039_v29  ;;  %v1329_v44 = vsub.f32 %v2579_v20, %v1293_v1  ;;  %v1337_v43 = vsub.f32 %v2521_v50, %v1293_v1  ;;  %v1318_v47 = vsub.f32 %v2526_v7, %v1281_v18  ;;  %v1319_v23 = vsub.f32 %v2526_v7, %v1285_v35 }
 0x11c   :  { %1971 = vmatmul.mubr.msk.f32.gmra.mxu1 %vm845_vm0, %v2401_v8  ;;  %v2565_v8 = vrot.slane %v1261_v17, %v1240_v55  ;;  %v1321_v61 = vsub.f32 %v2526_v7, %v1293_v1  ;;  %v1359_v54 = vand.u32 2147483647, %v1327_v62  ;;  %v1366_v63 = vand.u32 2147483647, %v1334_v36 }
 0x11d   :  { %1207 = vmatprep.mubr.f32.mxu1 %v2039_v29  ;;  %v1367_v40 = vand.u32 2147483647, %v1335_v57  ;;  %v1361_v42 = vand.u32 2147483647, %v1329_v44  ;;  %v1369_v19 = vand.u32 2147483647, %v1337_v43  ;;  %v1310_v3 = vsub.f32 %v2538_v12, %v1281_v18 }
 0x11e   :  { %1968 = vmatmul.mubr.msk.f32.gmra.mxu0 %vm845_vm0, %v2415_v38  ;;  %v1315_v34 = vsub.f32 %v2538_v12, %v2565_v8  ;;  %v1311_v58 = vsub.f32 %v2538_v12, %v1285_v35  ;;  %v1313_v24 = vsub.f32 %v2538_v12, %v1293_v1  ;;  %v1350_v4 = vand.u32 2147483647, %v1318_v47 }
 0x11f   :  { %1539 = vmatprep.mubr.f32.mxu0 %v2039_v29  ;;  %v1351_v33 = vand.u32 2147483647, %v1319_v23  ;;  %v1391_v6 = vsub.f32 1.0, %v1359_v54  ;;  %v1399_v15 = vsub.f32 1.0, %v1367_v40  ;;  %v1393_v26 = vsub.f32 1.0, %v1361_v42 }
 0x120   :  { %1972 = vmatmul.mubr.msk.f32.gmra.mxu1 %vm845_vm0, %v2415_v38  ;;  %v1249_v38 = vrot.slane %v2134_v37, %v1240_v55  ;;  %v1326_v37 = vsub.f32 %v2579_v20, %v1281_v18  ;;  %v1398_v22 = vsub.f32 1.0, %v1366_v63  ;;  %v1401_v59 = vsub.f32 1.0, %v1369_v19 }
 0x121   :  { %1610 = vmatprep.mubr.f32.mxu1 %v2039_v29  ;;  %v1343_v18 = vand.u32 2147483647, %v1311_v58  ;;  %v1345_v1 = vand.u32 2147483647, %v1313_v24  ;;  %v1382_v57 = vsub.f32 1.0, %v1350_v4  ;;  %v1383_v43 = vsub.f32 1.0, %v1351_v33 }
 0x122   :  { %v1289_v0 = vrot.slane %v1249_v38, %v1240_v55  ;;  %v1358_v32 = vand.u32 2147483647, %v1326_v37  ;;  %v1353_v55 = vand.u32 2147483647, %v1321_v61  ;;  %v1342_v38 = vand.u32 2147483647, %v1310_v3 }
 0x123   :  { %v1425_v61 = vmax.f32 %v1393_v26, 0.0  ;;  %v1430_v54 = vmax.f32 %v1398_v22, 0.0  ;;  %v1433_v40 = vmax.f32 %v1401_v59, 0.0 }
 0x124   :  { %v1328_v21 = vsub.f32 %v2579_v20, %v1289_v0  ;;  %v1336_v28 = vsub.f32 %v2521_v50, %v1289_v0  ;;  %v1320_v49 = vsub.f32 %v2526_v7, %v1289_v0  ;;  %v1312_v53 = vsub.f32 %v2538_v12, %v1289_v0 }
 0x125   :  { %v1390_v17 = vsub.f32 1.0, %v1358_v32  ;;  %v1375_v32 = vsub.f32 1.0, %v1343_v18 }
 0x126   :  { %v1360_v51 = vand.u32 2147483647, %v1328_v21  ;;  %v1368_v52 = vand.u32 2147483647, %v1336_v28  ;;  %v1352_v11 = vand.u32 2147483647, %v1320_v49 }
 0x127   :  { %v1344_v36 = vand.u32 2147483647, %v1312_v53  ;;  %v1385_v21 = vsub.f32 1.0, %v1353_v55  ;;  %v1423_v28 = vmax.f32 %v1391_v6, 0.0  ;;  %v1431_v49 = vmax.f32 %v1399_v15, 0.0 }
 0x128   :  { %v1392_v35 = vsub.f32 1.0, %v1360_v51  ;;  %v1400_v0 = vsub.f32 1.0, %v1368_v52  ;;  %v1384_v37 = vsub.f32 1.0, %v1352_v11  ;;  %v1422_v23 = vmax.f32 %v1390_v17, 0.0 }
 0x129   :  { %v1374_v51 = vsub.f32 1.0, %v1342_v38  ;;  %v1377_v52 = vsub.f32 1.0, %v1345_v1  ;;  %v1376_v4 = vsub.f32 1.0, %v1344_v36  ;;  %v1415_v11 = vmax.f32 %v1383_v43, 0.0 }
 0x12a   :  { %v1424_v42 = vmax.f32 %v1392_v35, 0.0  ;;  %v1432_v19 = vmax.f32 %v1400_v0, 0.0  ;;  %v1414_v6 = vmax.f32 %v1382_v57, 0.0  ;;  %v1417_v15 = vmax.f32 %v1385_v21, 0.0 }
 0x12b   :  { %v1407_v22 = vmax.f32 %v1375_v32, 0.0  ;;  %v1416_v59 = vmax.f32 %v1384_v37, 0.0  ;;  %v1406_v38 = vmax.f32 %v1374_v51, 0.0  ;;  %v1409_v0 = vmax.f32 %v1377_v52, 0.0 }
 0x12c   :  { %v1408_v1 = vmax.f32 %v1376_v4, 0.0  ;;  %v1338_v57 = vsub.f32 %v2521_v50, %v2544_v13  ;;  %v1331_v37 = vsub.f32 %v2579_v20, %v2565_v8  ;;  %v1332_v21 = vsub.f32 %v2579_v20, %v2553_v56 }
 0x12e   :  { %v1370_v32 = vand.u32 2147483647, %v1338_v57 }
 0x18b   :  { %v2577_v46 = vpop.f32.mrf.mxu0 }
 0x18d   :  { %v2581_v41 = vpop.f32.mrf.mxu1  ;;  %v2583_v14 = vpop.f32.mrf.mxu0 }
 0x18f   :  { %v2591_v27 = vpop.f32.mrf.mxu1  ;;  %v2593_v45 = vpop.f32.mrf.mxu0 }
 0x190   :  { %v1446_v36 = vmul.f32 %v1414_v6, %v2593_v45  ;;  %v2621_v45 = vld [vmem:[%s2738_s4] sm:$0xf] }
 0x191   :  { %v2600_v39 = vpop.f32.mrf.mxu1  ;;  %v2602_v2 = vpop.f32.mrf.mxu0 }
 0x192   :  { %v1447_v18 = vmul.f32 %v1415_v11, %v2602_v2  ;;  %v1438_v2 = vmul.f32 %v1406_v38, %v2577_v46  ;;  %v1349_v11 = vand.u32 2147483647, %v1317_v16 }
 0x193   :  { %v2607_v48 = vpop.f32.mrf.mxu1 }
 0x194   :  { %v936_v5 = vpop.f32.mrf.mxu0 }
 0x195   :  { %v1025_v60 = vpop.f32.mrf.mxu1  ;;  %v1454_v17 = vmul.f32 %v1422_v23, %v936_v5  ;;  %v1439_v5 = vmul.f32 %v1407_v22, %v2583_v14  ;;  %v1348_v22 = vand.u32 2147483647, %v1316_v9 }
 0x196   :  { %v938_v30 = vpop.f32.mrf.mxu0  ;;  %v1456_v35 = vmul.f32 %v1424_v42, %v1025_v60  ;;  %v1441_v60 = vmul.f32 %v1409_v0, %v2591_v27  ;;  %v2665_v42 = vand.u32 2147483647, %v1314_v25 }
 0x197   :  { %v1027_v62 = vpop.f32.mrf.mxu1  ;;  %v1455_v33 = vmul.f32 %v1423_v28, %v938_v30  ;;  %v1449_v30 = vmul.f32 %v1417_v15, %v2607_v48  ;;  %v1440_v48 = vmul.f32 %v1408_v1, %v2581_v41  ;;  %v1339_v41 = vsub.f32 %v2521_v50, %v2565_v8 }
 0x198   :  { %v942_v44 = vpop.f32.mrf.mxu0  ;;  %v1457_v26 = vmul.f32 %v1425_v61, %v1027_v62  ;;  %v1448_v62 = vmul.f32 %v1416_v59, %v2600_v39  ;;  %v1330_v39 = vsub.f32 %v2579_v20, %v2544_v13  ;;  %v1340_v28 = vsub.f32 %v2521_v50, %v2553_v56 }
 0x199   :  { %v1031_v47 = vpop.f32.mrf.mxu1  ;;  %v1462_v53 = vmul.f32 %v1430_v54, %v942_v44  ;;  %v1371_v23 = vand.u32 2147483647, %v1339_v41  ;;  %v1322_v61 = vsub.f32 %v2526_v7, %v2544_v13  ;;  %v1378_v15 = vsub.f32 1.0, %v2665_v42 }
 0x19a   :  { %v944_v63 = vpop.f32.mrf.mxu0  ;;  %v1464_v55 = vmul.f32 %v1432_v19, %v1031_v47  ;;  %v1323_v47 = vsub.f32 %v2526_v7, %v2565_v8  ;;  %v1363_v19 = vand.u32 2147483647, %v1331_v37  ;;  %v1381_v1 = vsub.f32 1.0, %v1349_v11 }
 0x19b   :  { %v1463_v3 = vmul.f32 %v1431_v49, %v944_v63  ;;  %v1033_v58 = vpop.f32.mrf.mxu1  ;;  %v1333_v49 = vsub.f32 %v2579_v20, %v2567_v31  ;;  %v1347_v20 = vand.u32 2147483647, %v1315_v34  ;;  %v1403_v4 = vsub.f32 1.0, %v1371_v23 }
 0x19c   :  { %v1465_v24 = vmul.f32 %v1433_v40, %v1033_v58  ;;  %v1362_v40 = vand.u32 2147483647, %v1330_v39  ;;  %v1324_v58 = vsub.f32 %v2526_v7, %v2553_v56  ;;  %v1355_v13 = vand.u32 2147483647, %v1323_v47 }
 0x19d   :  { %1499 = vmatprep.subr.mxu0 %v1463_v3  ;;  %v1365_v25 = vand.u32 2147483647, %v1333_v49  ;;  %v1402_v34 = vsub.f32 1.0, %v1370_v32  ;;  %v1379_v16 = vsub.f32 1.0, %v1347_v20 }
 0x19e   :  { %1570 = vmatprep.subr.mxu1 %v1465_v24  ;;  %1500 = vmatpush1.msra.mxu0 %v1462_v53  ;;  %v1364_v53 = vand.u32 2147483647, %v1332_v21  ;;  %v1372_v24 = vand.u32 2147483647, %v1340_v28  ;;  %v1356_v59 = vand.u32 2147483647, %v1324_v58 }
 0x19f   :  { %1571 = vmatpush1.msra.mxu1 %v1464_v55  ;;  %1501 = vmatprep.subr.mxu0 %v1455_v33  ;;  %v1354_v33 = vand.u32 2147483647, %v1322_v61  ;;  %v1394_v55 = vsub.f32 1.0, %v1362_v40  ;;  %v1387_v0 = vsub.f32 1.0, %v1355_v13  ;;  %v1380_v61 = vsub.f32 1.0, %v1348_v22 }
 0x1a0   :  { %1572 = vmatprep.subr.mxu1 %v1457_v26  ;;  %1502 = vmatpush1.msra.mxu0 %v1454_v17  ;;  %v1395_v17 = vsub.f32 1.0, %v1363_v19  ;;  %v1388_v56 = vsub.f32 1.0, %v1356_v59  ;;  %v1410_v58 = vmax.f32 %v1378_v15, 0.0 }
 0x1a1   :  { %1573 = vmatpush1.msra.mxu1 %v1456_v35  ;;  %1503 = vmatprep.subr.mxu0 %v1447_v18  ;;  %v1396_v18 = vsub.f32 1.0, %v1364_v53  ;;  %v1419_v28 = vmax.f32 %v1387_v0, 0.0  ;;  %v1412_v11 = vmax.f32 %v1380_v61, 0.0 }
 0x1a2   :  { %1574 = vmatprep.subr.mxu1 %v1449_v30  ;;  %1504 = vmatpush1.msra.mxu0 %v1446_v36  ;;  %v1397_v36 = vsub.f32 1.0, %v1365_v25  ;;  %v1435_v30 = vmax.f32 %v1403_v4, 0.0  ;;  %v1427_v39 = vmax.f32 %v1395_v17, 0.0  ;;  %v1413_v4 = vmax.f32 %v1381_v1, 0.0 }
 0x1a3   :  { %1575 = vmatpush1.msra.mxu1 %v1448_v62  ;;  %1505 = vmatprep.subr.mxu0 %v1439_v5  ;;  %v1386_v5 = vsub.f32 1.0, %v1354_v33  ;;  %v1426_v62 = vmax.f32 %v1394_v55, 0.0  ;;  %v1428_v9 = vmax.f32 %v1396_v18, 0.0 }
 0x1a4   :  { %1576 = vmatprep.subr.mxu1 %v1441_v60  ;;  %1506 = vmatpush1.msra.mxu0 %v1438_v2  ;;  %v1434_v2 = vmax.f32 %v1402_v34, 0.0  ;;  %v1429_v49 = vmax.f32 %v1397_v36, 0.0 }
 0x1a5   :  { %1577 = vmatpush1.msra.mxu1 %v1440_v48  ;;  %1973 = vmatmul.mubr.msk.f32.vlgmr.msra.gmra.mxu0 %vm1471_vm1, %v2621_v45  ;;  %v1418_v40 = vmax.f32 %v1386_v5, 0.0 }
 0x1a6   :  { %1974 = vmatmul.mubr.msk.f32.vlgmr.msra.gmra.mxu1 %vm1471_vm1, %v2621_v45  ;;  %1681 = vmatprep.mubr.f32.mxu0 %v2039_v29 }
 0x1a7   :  { %1752 = vmatprep.mubr.f32.mxu1 %v2039_v29  ;;  %v1341_v29 = vsub.f32 %v2521_v50, %v2567_v31  ;;  %v1325_v50 = vsub.f32 %v2526_v7, %v2567_v31  ;;  %v1404_v31 = vsub.f32 1.0, %v1372_v24  ;;  %v1420_v24 = vmax.f32 %v1388_v56, 0.0 }
 0x1a9   :  { %v1373_v3 = vand.u32 2147483647, %v1341_v29  ;;  %v1357_v7 = vand.u32 2147483647, %v1325_v50  ;;  %v1436_v29 = vmax.f32 %v1404_v31, 0.0  ;;  %v1411_v50 = vmax.f32 %v1379_v16, 0.0 }
 0x1ab   :  { %v1405_v26 = vsub.f32 1.0, %v1373_v3  ;;  %v1389_v41 = vsub.f32 1.0, %v1357_v7 }
 0x1ad   :  { %v1437_v12 = vmax.f32 %v1405_v26, 0.0  ;;  %v1421_v3 = vmax.f32 %v1389_v41, 0.0 }
 0x1d2   :  { %v2630_v46 = vpop.f32.mrf.mxu0 }
 0x1d4   :  { %v2634_v14 = vpop.f32.mrf.mxu1  ;;  %v2636_v27 = vpop.f32.mrf.mxu0 }
 0x1d5   :  { %v1443_v25 = vmul.f32 %v1411_v50, %v2636_v27  ;;  %v1444_v55 = vmul.f32 %v1412_v11, %v2634_v14 }
 0x1d6   :  { %v2646_v44 = vpop.f32.mrf.mxu1  ;;  %v2648_v43 = vpop.f32.mrf.mxu0 }
 0x1d7   :  { %v1450_v53 = vmul.f32 %v1418_v40, %v2648_v43  ;;  %v1445_v43 = vmul.f32 %v1413_v4, %v2646_v44  ;;  %v2012_v44 = vld [vmem:[%s2734_s0 + $0x8] sm:$0x77] }
 0x1d8   :  { %v2660_v54 = vpop.f32.mrf.mxu1  ;;  %v1110_v63 = vpop.f32.mrf.mxu0  ;;  %v1768_v14 = vmul.f32 %v2012_v44, %v2012_v44 }
 0x1d9   :  { %v1451_v19 = vmul.f32 %v1419_v28, %v1110_v63  ;;  %v1442_v63 = vmul.f32 %v1410_v58, %v2630_v46  ;;  %v1452_v33 = vmul.f32 %v1420_v24, %v2660_v54  ;;  %v2011_v46 = vld [vmem:[%s2734_s0] sm:$0x77] }
 0x1da   :  { %v2674_v51 = vpop.f32.mrf.mxu1  ;;  %v1114_v52 = vpop.f32.mrf.mxu0  ;;  %v1767_v27 = vmul.f32 %v2011_v46, %v2011_v46 }
 0x1db   :  { %v1458_v32 = vmul.f32 %v1426_v62, %v1114_v52  ;;  %v1453_v52 = vmul.f32 %v1421_v3, %v2674_v51  ;;  %v1776_v51 = vcombine.high %v1768_v14, %v1768_v14 }
 0x1dc   :  { %v1203_v6 = vpop.f32.mrf.mxu1  ;;  %v1116_v8 = vpop.f32.mrf.mxu0  ;;  %v1775_v54 = vcombine.high %v1767_v27, %v1767_v27 }
 0x1dd   :  { %v1459_v47 = vmul.f32 %v1427_v39, %v1116_v8  ;;  %v1460_v13 = vmul.f32 %v1428_v9, %v1203_v6  ;;  %v1784_v6 = vsel %vm1783_vm2, %v1767_v27, 0.0  ;;  %v1798_v8 = vsel %vm1783_vm2, %v1768_v14, 0.0 }
 0x1de   :  { %v1205_v35 = vpop.f32.mrf.mxu1  ;;  %v1120_v38 = vpop.f32.mrf.mxu0  ;;  %v1791_v34 = vsel %vm1783_vm2, %v1775_v54, 0.0  ;;  %v1805_v15 = vsel %vm1783_vm2, %v1776_v51, 0.0  ;;  %v1799_v7 = vrot.slane %v1798_v8, 4 }
 0x1df   :  { %v1466_v37 = vmul.f32 %v1434_v2, %v1120_v38  ;;  %v1461_v20 = vmul.f32 %v1429_v49, %v1205_v35  ;;  %v1792_v17 = vrot.slane %v1791_v34, 4  ;;  %v1806_v26 = vrot.slane %v1805_v15, 4 }
 0x1e0   :  { %v1209_v60 = vpop.f32.mrf.mxu1  ;;  %v1122_v48 = vpop.f32.mrf.mxu0  ;;  %v1800_v59 = vadd.f32 %v1799_v7, %v1798_v8 }
 0x1e1   :  { %v1467_v57 = vmul.f32 %v1435_v30, %v1122_v48  ;;  %v1468_v42 = vmul.f32 %v1436_v29, %v1209_v60  ;;  %v1793_v18 = vadd.f32 %v1792_v17, %v1791_v34  ;;  %v1807_v35 = vadd.f32 %v1806_v26, %v1805_v15  ;;  %v2013_v26 = vld [vmem:[%s2734_s0 + $0x10] sm:$0x77] }
 0x1e2   :  { %v1211_v21 = vpop.f32.mrf.mxu1  ;;  %v1801_v31 = vrot.slane %v1800_v59, 2 }
 0x1e3   :  { %v1469_v23 = vmul.f32 %v1437_v12, %v1211_v21  ;;  %1641 = vmatprep.subr.mxu0 %v1467_v57  ;;  %v1794_v16 = vrot.slane %v1793_v18, 2  ;;  %v1808_v0 = vrot.slane %v1807_v35, 2 }
 0x1e4   :  { %1642 = vmatpush1.msra.mxu0 %v1466_v37  ;;  %v1802_v30 = vadd.f32 %v1801_v31, %v1800_v59  ;;  %v2014_v59 = vld [vmem:[%s2734_s0 + $0x18] sm:$0x77]  ;;  %s2040_s0 = smov [#allocation2]  }
 0x1e5   :  { %1712 = vmatprep.subr.mxu1 %v1469_v23  ;;  %1643 = vmatprep.subr.mxu0 %v1459_v47  ;;  %v1795_v1 = vadd.f32 %v1794_v16, %v1793_v18  ;;  %v1809_v5 = vadd.f32 %v1808_v0, %v1807_v35  ;;  %v1770_v18 = vmul.f32 %v2014_v59, %v2014_v59  ;;  %s1949_s13 = sshll.u32 %s2040_s0, 4  ;;  %s1950_s13 = int_to_ptr.vmem [resolvable:$true] %s1949_s13 }
 0x1e6   :  { %1713 = vmatpush1.msra.mxu1 %v1468_v42  ;;  %1644 = vmatpush1.msra.mxu0 %v1458_v32  ;;  %v1803_v2 = vrot.slane %v1802_v30, 1  ;;  %s2015_s14 = scalar_lea.vmem %s1950_s13, 512  ;;  %p2020_p1 = scmp.lt.s32.totalorder %s1950_s13, %s1950_s13 }
 0x1e7   :  { %1714 = vmatprep.subr.mxu1 %v1461_v20  ;;  %1645 = vmatprep.subr.mxu0 %v1451_v19  ;;  %v1796_v60 = vrot.slane %v1795_v1, 1  ;;  %v1810_v48 = vrot.slane %v1809_v5, 1  ;;  %v1778_v31 = vcombine.high %v1770_v18, %v1770_v18  ;;  %v1826_v16 = vsel %vm1783_vm2, %v1770_v18, 0.0  ;;  %p2016_p0 = scmp.ne.s32.totalorder %s1950_s13, %s2015_s14  ;;  %p2021_p2 = scmp.lt.s32.totalorder %s2015_s14, %s2015_s14 }
 0x1e8   :  { %1715 = vmatpush1.msra.mxu1 %v1460_v13  ;;  %1646 = vmatpush1.msra.mxu0 %v1450_v53  ;;  %v1804_v39 = vadd.f32 %v1803_v2, %v1802_v30 }
 0x1e9   :  { %1716 = vmatprep.subr.mxu1 %v1453_v52  ;;  %1647 = vmatprep.subr.mxu0 %v1443_v25  ;;  %v1797_v57 = vadd.f32 %v1796_v60, %v1795_v1  ;;  %v1811_v12 = vadd.f32 %v1810_v48, %v1809_v5  ;;  %v1833_v30 = vsel %vm1783_vm2, %v1778_v31, 0.0  ;;  %v1827_v1 = vrot.slane %v1826_v16, 4  ;;  %p2022_p3 = por %p2021_p2, %p2020_p1 }
 0x1ea   :  { %1717 = vmatpush1.msra.mxu1 %v1452_v33  ;;  %1648 = vmatpush1.msra.mxu0 %v1442_v63  ;;  %vm1856_vm4 = vcmp.eq.f32.partialorder %v1804_v39, inf  ;;  %v1859_v40 = vand.u32 2147483648, %v1804_v39  ;;  %vm1858_vm8 = vcmp.eq.f32.partialorder %v1804_v39, 0.0  ;;  %v1834_v2 = vrot.slane %v1833_v30, 4 }
 0x1eb   :  { %1718 = vmatprep.subr.mxu1 %v1445_v43  ;;  %1975 = vmatmul.mubr.msk.f32.vlgmr.msra.gmra.mxu0 %vm1471_vm1, %v2621_v45  ;;  %vm1849_vm5 = vcmp.eq.f32.partialorder %v1797_v57, inf  ;;  %vm1863_vm7 = vcmp.eq.f32.partialorder %v1811_v12, inf  ;;  %v1852_v42 = vand.u32 2147483648, %v1797_v57  ;;  %vm1851_vm9 = vcmp.eq.f32.partialorder %v1797_v57, 0.0  ;;  %p2023_p4 = pnand %p2022_p3, %p2016_p0 }
 0x1ec   :  { %1719 = vmatpush1.msra.mxu1 %v1444_v55  ;;  %v1866_v19 = vand.u32 2147483648, %v1811_v12  ;;  %vm1865_vm10 = vcmp.eq.f32.partialorder %v1811_v12, 0.0  ;;  %v1828_v60 = vadd.f32 %v1827_v1, %v1826_v16 }
 0x1ed   :  { %1976 = vmatmul.mubr.msk.f32.vlgmr.msra.gmra.mxu1 %vm1471_vm1, %v2621_v45  ;;  %v1785_v45 = vrot.slane %v1784_v6, 4 }
 0x1ef   :  { %v1786_v22 = vadd.f32 %v1785_v45, %v1784_v6 }
 0x1f1   :  { %v1787_v38 = vrot.slane %v1786_v22, 2 }
 0x1f3   :  { %v1788_v36 = vadd.f32 %v1787_v38, %v1786_v22  ;;  %v1769_v22 = vmul.f32 %v2013_v26, %v2013_v26 }
 0x1f5   :  { %v1789_v62 = vrot.slane %v1788_v36, 1  ;;  %v1777_v35 = vcombine.high %v1769_v22, %v1769_v22  ;;  %v1812_v38 = vsel %vm1783_vm2, %v1769_v22, 0.0 }
 0x1f6   :  { %v1813_v0 = vrot.slane %v1812_v38, 4 }
 0x1f7   :  { %v1790_v41 = vadd.f32 %v1789_v62, %v1788_v36  ;;  %v1819_v36 = vsel %vm1783_vm2, %v1777_v35, 0.0 }
 0x1f8   :  { %v1820_v5 = vrot.slane %v1819_v36, 4  ;;  %v1814_v62 = vadd.f32 %v1813_v0, %v1812_v38 }
 0x1f9   :  { %1995 = vrsqrt.f32 %v1790_v41  ;;  %vm1842_vm3 = vcmp.eq.f32.partialorder %v1790_v41, inf  ;;  %v1845_v49 = vand.u32 2147483648, %v1790_v41  ;;  %vm1844_vm6 = vcmp.eq.f32.partialorder %v1790_v41, 0.0 }
 0x1fa   :  { %1997 = vrsqrt.f32 %v1804_v39  ;;  %v1821_v48 = vadd.f32 %v1820_v5, %v1819_v36 }
 0x1fb   :  { %1999 = vrsqrt.f32 %v1797_v57 }
 0x1fc   :  { %2001 = vrsqrt.f32 %v1811_v12 }
 0x206   :  { %v1996_v56 = vpop.eup %1995 }
 0x207   :  { %v1998_v9 = vpop.eup %1997  ;;  %v1841_v21 = vmul.f32 %v1996_v56, %v1790_v41 }
 0x208   :  { %v2000_v37 = vpop.eup %1999  ;;  %v1855_v28 = vmul.f32 %v1998_v9, %v1804_v39 }
 0x209   :  { %v2002_v29 = vpop.eup %2001  ;;  %v1848_v47 = vmul.f32 %v2000_v37, %v1797_v57  ;;  %v1843_v61 = vsel %vm1842_vm3, %v1790_v41, %v1841_v21  ;;  %v1815_v41 = vrot.slane %v1814_v62, 2 }
 0x20a   :  { %v1862_v23 = vmul.f32 %v2002_v29, %v1811_v12  ;;  %v1857_v32 = vsel %vm1856_vm4, %v1804_v39, %v1855_v28  ;;  %v1846_v3 = vsel %vm1844_vm6, %v1845_v49, %v1843_v61  ;;  %v1835_v39 = vadd.f32 %v1834_v2, %v1833_v30 }
 0x20b   :  { %v1850_v50 = vsel %vm1849_vm5, %v1797_v57, %v1848_v47  ;;  %v1860_v58 = vsel %vm1858_vm8, %v1859_v40, %v1857_v32  ;;  %v1829_v57 = vrot.slane %v1828_v60, 2  ;;  %v1816_v56 = vadd.f32 %v1815_v41, %v1814_v62 }
 0x20c   :  { %v1864_v20 = vsel %vm1863_vm7, %v1811_v12, %v1862_v23  ;;  %v1853_v24 = vsel %vm1851_vm9, %v1852_v42, %v1850_v50  ;;  %v1822_v12 = vrot.slane %v1821_v48, 2  ;;  %v1836_v9 = vrot.slane %v1835_v39, 2 }
 0x20d   :  { %v1867_v52 = vsel %vm1865_vm10, %v1866_v19, %v1864_v20  ;;  %v1830_v37 = vadd.f32 %v1829_v57, %v1828_v60  ;;  %v1817_v21 = vrot.slane %v1816_v56, 1 }
 0x20e   :  { %v1823_v29 = vadd.f32 %v1822_v12, %v1821_v48  ;;  %v1837_v28 = vadd.f32 %v1836_v9, %v1835_v39 }
 0x20f   :  { %v1831_v47 = vrot.slane %v1830_v37, 1  ;;  %v1818_v23 = vadd.f32 %v1817_v21, %v1816_v56 }
 0x210   :  { %v1824_v49 = vrot.slane %v1823_v29, 1  ;;  %v1838_v61 = vrot.slane %v1837_v28, 1 }
 0x211   :  { %v1832_v40 = vadd.f32 %v1831_v47, %v1830_v37  ;;  %2003 = vrsqrt.f32 %v1818_v23  ;;  %vm1870_vm12 = vcmp.eq.f32.partialorder %v1818_v23, inf  ;;  %vm1872_vm14 = vcmp.eq.f32.partialorder %v1818_v23, 0.0 }
 0x212   :  { %v1825_v32 = vadd.f32 %v1824_v49, %v1823_v29  ;;  %v1839_v42 = vadd.f32 %v1838_v61, %v1837_v28 }
 0x213   :  { %2005 = vrsqrt.f32 %v1832_v40  ;;  %vm1884_vm13 = vcmp.eq.f32.partialorder %v1832_v40, inf  ;;  %vm1886_vm1 = vcmp.eq.f32.partialorder %v1832_v40, 0.0 }
 0x214   :  { %2007 = vrsqrt.f32 %v1825_v32  ;;  %vm1877_vm15 = vcmp.eq.f32.partialorder %v1825_v32, inf  ;;  %vm1891_vm0 = vcmp.eq.f32.partialorder %v1839_v42, inf  ;;  %vm1879_vm2 = vcmp.eq.f32.partialorder %v1825_v32, 0.0 }
 0x215   :  { %2009 = vrsqrt.f32 %v1839_v42  ;;  %vm1893_vm3 = vcmp.eq.f32.partialorder %v1839_v42, 0.0 }
 0x21e   :  { %v2004_v50 = vpop.eup %2003 }
 0x21f   :  { %v1869_v20 = vmul.f32 %v2004_v50, %v1818_v23 }
 0x220   :  { %v2006_v19 = vpop.eup %2005 }
 0x265   :  { %v1541_v53 = vpop.f32.mrf.mxu0 }
 0x266   :  { %v1759_v13 = vmax.f32 %v1541_v53, 0.0  ;;  %v1896_v25 = vadd.f32 %v1846_v3, %v1541_v53  ;;  %v1612_v4 = vpop.f32.mrf.mxu1  ;;  %v2008_v3 = vpop.eup %2007  ;;  %v1883_v53 = vmul.f32 %v2006_v19, %v1832_v40 }
 0x267   :  { %v1761_v63 = vmax.f32 %v1612_v4, 0.0  ;;  %v1898_v11 = vadd.f32 %v1860_v58, %v1612_v4  ;;  %v1543_v33 = vpop.f32.mrf.mxu0  ;;  %v2010_v58 = vpop.eup %2009 }
 0x268   :  { %v1977_v43 = vadd.f32 -1.0, %v1896_v25  ;;  %v1760_v55 = vmax.f32 %v1543_v33, 0.0  ;;  %v1897_v46 = vadd.f32 %v1853_v24, %v1543_v33  ;;  %v1614_v27 = vpop.f32.mrf.mxu1  ;;  %v1873_v24 = vand.u32 2147483648, %v1818_v23 }
 0x269   :  { %v1979_v44 = vadd.f32 -1.0, %v1898_v11  ;;  %v1762_v14 = vmax.f32 %v1614_v27, 0.0  ;;  %v1899_v54 = vadd.f32 %v1867_v52, %v1614_v27  ;;  %v1871_v25 = vsel %vm1870_vm12, %v1818_v23, %v1869_v20 }
 0x26a   :  { %v1915_v51 = vsel %vm1914_vm11, %v1759_v13, %v1977_v43  ;;  %v1978_v6 = vadd.f32 -1.0, %v1897_v46  ;;  %v1876_v13 = vmul.f32 %v2008_v3, %v1825_v32  ;;  %v1890_v4 = vmul.f32 %v2010_v58, %v1839_v42 }
 0x26b   :  { %v1917_v8 = vsel %vm1914_vm11, %v1761_v63, %v1979_v44  ;;  %v1980_v34 = vadd.f32 -1.0, %v1899_v54  ;;  %v1887_v52 = vand.u32 2147483648, %v1832_v40  ;;  %v1885_v63 = vsel %vm1884_vm13, %v1832_v40, %v1883_v53 }
 0x26c   :  { %v1916_v45 = vsel %vm1914_vm11, %v1760_v55, %v1978_v6  ;;  %v1880_v11 = vand.u32 2147483648, %v1825_v32  ;;  %v1874_v33 = vsel %vm1872_vm14, %v1873_v24, %v1871_v25  ;;  %v1878_v43 = vsel %vm1877_vm15, %v1825_v32, %v1876_v13 }
 0x26d   :  { %v1931_v15 = vcombine.low %v1915_v51, %v1916_v45  ;;  %v1918_v7 = vsel %vm1914_vm11, %v1762_v14, %v1980_v34  ;;  %v1894_v55 = vand.u32 2147483648, %v1839_v42  ;;  %v1892_v46 = vsel %vm1891_vm0, %v1839_v42, %v1890_v4 }
 0x26e   :  { %v1932_v17 = vcombine.low %v1917_v8, %v1918_v7  ;;  %v1888_v44 = vsel %vm1886_vm1, %v1887_v52, %v1885_v63  ;;  %v1881_v54 = vsel %vm1879_vm2, %v1880_v11, %v1878_v43 }
 0x26f   :  { %1939 = vst [vmem:[#allocation2] sm:$0xff] %v1931_v15  ;;  %v1895_v8 = vsel %vm1893_vm3, %v1894_v55, %v1892_v46 }
 0x270   :  { %1940 = vst [vmem:[#allocation2 + $0x8] sm:$0xff] %v1932_v17 }
 0x2ab   :  { %v1683_v27 = vpop.f32.mrf.mxu0 }
 0x2ac   :  { %v1900_v14 = vadd.f32 %v1874_v33, %v1683_v27  ;;  %v1763_v22 = vmax.f32 %v1683_v27, 0.0 }
 0x2ad   :  { %v1754_v51 = vpop.f32.mrf.mxu1  ;;  %v1685_v6 = vpop.f32.mrf.mxu0 }
 0x2ae   :  { %v1902_v34 = vadd.f32 %v1888_v44, %v1754_v51  ;;  %v1981_v45 = vadd.f32 -1.0, %v1900_v14  ;;  %v1901_v15 = vadd.f32 %v1881_v54, %v1685_v6  ;;  %v1764_v59 = vmax.f32 %v1685_v6, 0.0 }
 0x2af   :  { %v1756_v7 = vpop.f32.mrf.mxu1  ;;  %v1765_v35 = vmax.f32 %v1754_v51, 0.0 }
 0x2b0   :  { %v1983_v17 = vadd.f32 -1.0, %v1902_v34  ;;  %v1903_v26 = vadd.f32 %v1895_v8, %v1756_v7  ;;  %v1982_v18 = vadd.f32 -1.0, %v1901_v15  ;;  %v1766_v38 = vmax.f32 %v1756_v7, 0.0 }
 0x2b1   :  { %v1919_v16 = vsel %vm1914_vm11, %v1763_v22, %v1981_v45 }
 0x2b2   :  { %v1984_v31 = vadd.f32 -1.0, %v1903_v26  ;;  %v1920_v0 = vsel %vm1914_vm11, %v1764_v59, %v1982_v18  ;;  %v1921_v36 = vsel %vm1914_vm11, %v1765_v35, %v1983_v17 }
 0x2b3   :  { %v1933_v30 = vcombine.low %v1919_v16, %v1920_v0 }
 0x2b4   :  { %v1922_v1 = vsel %vm1914_vm11, %v1766_v38, %v1984_v31 }
 0x2b5   :  { %v1934_v5 = vcombine.low %v1921_v36, %v1922_v1  ;;  %1941 = vst [vmem:[#allocation2 + $0x10] sm:$0xff] %v1933_v30 }
 0x2b7   :  { %1942 = vst [vmem:[#allocation2 + $0x18] sm:$0xff] %v1934_v5 }
 0x2b8   :  { %2026 = shalt.err (!%p2023_p4)
}
 0x2b9   :  { %1952 = dma.vmem_to_hbm [thread:$0]  %s1950_s13, 512, %s2739_s5, [#allocation3]  }
 0x2ba   :  { %2035 = dma.done.wait [#allocation3], 512  }
 0x2bb   :  { %2036 = vsyncadd [#allocation3], 4294966784 }
 0x2bc   :  { %1956 = vsyncpa [#allocation3], 1 }

</bundles_post_ra>
